<compile_context>
chip_gen: v7x
topology: tpu7x:2x2x1
jax: 0.10.0
libtpu: 0.0.40
codegen_flags: <defaults>
</compile_context>

<pallas_src>
import jax
import jax.numpy as jnp
from jax.experimental import pallas as pl
from jax.experimental.pallas import tpu as pltpu

EPS = 1e-5


def conv_bn_relu_kernel(x_ref, w_ref, gamma_ref, beta_ref, o_ref):
    # x_ref:     (Cin,  M)        bf16 activations (channels on sublanes, spatial on lanes)
    # w_ref:     (Cout_blk, Cin)  bf16 1x1-conv weight block (PyTorch layout, no transpose)
    # gamma_ref: (Cout_blk, 1)    f32 BN scale
    # beta_ref:  (Cout_blk, 1)    f32 BN shift
    # o_ref:     (Cout_blk, M)
    # 1x1 conv == W @ X on the MXU, f32 accumulation.
    y = jnp.dot(w_ref[...], x_ref[...], preferred_element_type=jnp.float32)  # (Cblk, M) f32

    # One-pass BatchNorm statistics over the batch*spatial axis (lanes), f32.
    # Training-mode semantics: batch statistics, biased variance.
    inv_m = 1.0 / jnp.float32(y.shape[1])
    s1 = jnp.sum(y, axis=1, keepdims=True)        # (Cblk, 1)
    s2 = jnp.sum(y * y, axis=1, keepdims=True)    # (Cblk, 1)
    mean = s1 * inv_m
    var = jnp.maximum(s2 * inv_m - mean * mean, 0.0)
    inv_std = jax.lax.rsqrt(var + EPS)

    # Fold BN affine into a single per-channel scale/bias FMA.
    scale = gamma_ref[...] * inv_std              # (Cblk, 1)
    bias = beta_ref[...] - mean * scale           # (Cblk, 1)

    o_ref[...] = jnp.maximum(y * scale + bias, 0.0).astype(o_ref.dtype)


def conv2d_bn_relu(x_nchw, w_oihw, gamma, beta):
    """x_nchw: (N, Cin, H, W); w_oihw: (Cout, Cin, 1, 1); gamma/beta: (Cout,).

    Expects bf16 x / weight for best DMA behavior; casts if given f32.
    Output dtype follows x's dtype.
    """
    n, cin, h, wd = x_nchw.shape
    cout = w_oihw.shape[0]
    m = n * h * wd
    out_dtype = x_nchw.dtype

    # NCHW -> (Cin, M).  Zero-copy reshape when N == 1 (the module's case).
    if n == 1:
        x_mat = x_nchw.reshape(cin, m)
    else:
        # TODO(synk): replace with grid-over-N two-phase BN to avoid this HBM transpose.
        x_mat = jnp.transpose(x_nchw, (1, 0, 2, 3)).reshape(cin, m)

    # bf16 operands at the HBM boundary.  No per-call cast when the caller
    # already supplies bf16 (weight converted once at parameter init).
    x_bf = x_mat if x_mat.dtype == jnp.bfloat16 else x_mat.astype(jnp.bfloat16)
    w_mat = w_oihw.reshape(cout, cin)              # zero-copy, already (Cout, Cin)
    w_bf = w_mat if w_mat.dtype == jnp.bfloat16 else w_mat.astype(jnp.bfloat16)

    gamma2 = gamma.reshape(cout, 1).astype(jnp.float32)
    beta2 = beta.reshape(cout, 1).astype(jnp.float32)

    # Split Cout across TensorCores (v7x has 2 TCs/chip); BN stats are per-channel
    # so each block is fully independent.  Block rows must stay a multiple of 8.
    if cout % 2 == 0 and (cout // 2) % 8 == 0:
        n_blocks = 2
    else:
        n_blocks = 1
    cblk = cout // n_blocks

    out_itemsize = jnp.dtype(out_dtype).itemsize
    cost = pl.CostEstimate(
        flops=2 * m * cin * cout,
        transcendentals=cout,  # rsqrt per channel
        bytes_accessed=(cin * m + cout * cin) * 2      # bf16 x and weight
        + 2 * cout * 4                                 # gamma/beta (f32)
        + cout * m * out_itemsize,                     # output
    )

    out_mat = pl.pallas_call(
        conv_bn_relu_kernel,
        out_shape=jax.ShapeDtypeStruct((cout, m), out_dtype),
        grid=(n_blocks,),
        in_specs=[
            pl.BlockSpec((cin, m), lambda j: (0, 0)),     # full x, fetched once
            pl.BlockSpec((cblk, cin), lambda j: (j, 0)),  # weight row-block
            pl.BlockSpec((cblk, 1), lambda j: (j, 0)),    # gamma block
            pl.BlockSpec((cblk, 1), lambda j: (j, 0)),    # beta block
        ],
        out_specs=pl.BlockSpec((cblk, m), lambda j: (j, 0)),
        compiler_params=pltpu.CompilerParams(dimension_semantics=("parallel",)),
        cost_estimate=cost,
    )(x_bf, w_bf, gamma2, beta2)

    # (Cout, M) -> NCHW (zero-copy for N == 1).
    if n == 1:
        return out_mat.reshape(1, cout, h, wd)
    return jnp.transpose(out_mat.reshape(cout, n, h, wd), (1, 0, 2, 3))


if __name__ == "__main__":
    # Shapes implied by the module: x = (1, 336, 14, 14), 1x1 conv 336 -> 336.
    N, C, H, W = 1, 336, 14, 14

    key = jax.random.PRNGKey(0)
    kx, kw = jax.random.split(key)

    x_f32 = jax.random.normal(kx, (N, C, H, W), dtype=jnp.float32)
    # Conv2d(336, 336, 1, 1, bias=False) weight, deterministic init.
    w_f32 = jax.random.normal(kw, (C, C, 1, 1), dtype=jnp.float32) * 0.05
    # BatchNorm2d default affine init: gamma=1, beta=0.
    gamma = jnp.ones((C,), dtype=jnp.float32)
    beta = jnp.zeros((C,), dtype=jnp.float32)

    # Parameter-init-time conversion (done once, not per forward call).
    w_bf16 = w_f32.astype(jnp.bfloat16)
    # Upstream producer emits bf16 activations.
    x_bf16 = x_f32.astype(jnp.bfloat16)

    out = conv2d_bn_relu(x_bf16, w_bf16, gamma, beta)
    jax.block_until_ready(out)
    assert out.shape == (N, C, H, W), out.shape

    # Reference check (f32 math on the same bf16-quantized operands), train-mode BN.
    xr = x_bf16.astype(jnp.float32).reshape(C, H * W)
    wr = w_bf16.astype(jnp.float32).reshape(C, C)
    y_ref = wr @ xr                                           # (C, M)
    mean_ref = y_ref.mean(axis=1, keepdims=True)
    var_ref = y_ref.var(axis=1, keepdims=True)                # biased variance
    ref = jnp.maximum(
        (y_ref - mean_ref) / jnp.sqrt(var_ref + EPS) * gamma.reshape(C, 1)
        + beta.reshape(C, 1),
        0.0,
    ).reshape(1, C, H, W)

    max_err = float(jnp.max(jnp.abs(out.astype(jnp.float32) - ref)))
    assert max_err < 5e-2, f"max abs error {max_err}"
    print("KERNEL_OK")
</pallas_src>

<mosaic_0001>
module attributes {stable_mosaic.version = 11 : i64} {
  func.func @conv_bn_relu_kernel(%arg0: i32, %arg1: memref<336x196xbf16, #tpu.memory_space<vmem>>, %arg2: memref<168x336xbf16, #tpu.memory_space<vmem>>, %arg3: memref<168x1xf32, #tpu.memory_space<vmem>>, %arg4: memref<168x1xf32, #tpu.memory_space<vmem>>, %arg5: memref<168x196xbf16, #tpu.memory_space<vmem>>) attributes {dimension_semantics = [#tpu.dimension_semantics<parallel>], iteration_bounds = array<i64: 2>, scalar_prefetch = 0 : i64, scratch_operands = 0 : i64, tpu.core_type = #tpu.core_type<tc>, window_params = [{pipeline_mode = #tpu.pipeline_mode<synchronous>, transform_indices = @transform_0, window_bounds = array<i64: 336, 196>}, {transform_indices = @transform_1, window_bounds = array<i64: 168, 336>}, {transform_indices = @transform_2, window_bounds = array<i64: 168, 1>}, {transform_indices = @transform_3, window_bounds = array<i64: 168, 1>}, {transform_indices = @transform_4, window_bounds = array<i64: 168, 196>}]} {
    %c0 = arith.constant 0 : index
    %c0_0 = arith.constant 0 : index
    %0 = vector.load %arg2[%c0, %c0_0] : memref<168x336xbf16, #tpu.memory_space<vmem>>, vector<168x336xbf16>
    %c0_1 = arith.constant 0 : index
    %c0_2 = arith.constant 0 : index
    %1 = vector.load %arg1[%c0_1, %c0_2] : memref<336x196xbf16, #tpu.memory_space<vmem>>, vector<336x196xbf16>
    %cst = arith.constant dense<0.000000e+00> : vector<168x196xf32>
    %2 = tpu.matmul %0, %1, %cst {dimension_numbers = #tpu.dot_dimension_numbers<[1], [0], [0], [1], [0, 0, 1, 1], [], []>} : vector<168x336xbf16>, vector<336x196xbf16>, vector<168x196xf32> -> vector<168x196xf32>
    %cst_3 = arith.constant 1.000000e+00 : f32
    %cst_4 = arith.constant 1.960000e+02 : f32
    %3 = arith.divf %cst_3, %cst_4 : f32
    %cst_5 = arith.constant dense<0.000000e+00> : vector<168xf32>
    %4 = vector.multi_reduction <add>, %2, %cst_5 [1] : vector<168x196xf32> to vector<168xf32>
    %5 = vector.shape_cast %4 : vector<168xf32> to vector<168x1xf32>
    %6 = arith.mulf %2, %2 : vector<168x196xf32>
    %cst_6 = arith.constant dense<0.000000e+00> : vector<168xf32>
    %7 = vector.multi_reduction <add>, %6, %cst_6 [1] : vector<168x196xf32> to vector<168xf32>
    %8 = vector.shape_cast %7 : vector<168xf32> to vector<168x1xf32>
    %9 = vector.broadcast %3 : f32 to vector<168x1xf32>
    %10 = arith.mulf %5, %9 : vector<168x1xf32>
    %11 = vector.broadcast %3 : f32 to vector<168x1xf32>
    %12 = arith.mulf %8, %11 : vector<168x1xf32>
    %13 = arith.mulf %10, %10 : vector<168x1xf32>
    %14 = arith.subf %12, %13 : vector<168x1xf32>
    %cst_7 = arith.constant 0.000000e+00 : f32
    %15 = vector.broadcast %cst_7 : f32 to vector<168x1xf32>
    %16 = arith.maximumf %14, %15 : vector<168x1xf32>
    %cst_8 = arith.constant 9.99999974E-6 : f32
    %17 = vector.broadcast %cst_8 : f32 to vector<168x1xf32>
    %18 = arith.addf %16, %17 : vector<168x1xf32>
    %19 = math.rsqrt %18 : vector<168x1xf32>
    %c0_9 = arith.constant 0 : index
    %c0_10 = arith.constant 0 : index
    %20 = vector.load %arg3[%c0_9, %c0_10] : memref<168x1xf32, #tpu.memory_space<vmem>>, vector<168x1xf32>
    %21 = arith.mulf %20, %19 : vector<168x1xf32>
    %c0_11 = arith.constant 0 : index
    %c0_12 = arith.constant 0 : index
    %22 = vector.load %arg4[%c0_11, %c0_12] : memref<168x1xf32, #tpu.memory_space<vmem>>, vector<168x1xf32>
    %23 = arith.mulf %10, %21 : vector<168x1xf32>
    %24 = arith.subf %22, %23 : vector<168x1xf32>
    %25 = vector.broadcast %21 : vector<168x1xf32> to vector<168x196xf32>
    %26 = arith.mulf %2, %25 : vector<168x196xf32>
    %27 = vector.broadcast %24 : vector<168x1xf32> to vector<168x196xf32>
    %28 = arith.addf %26, %27 : vector<168x196xf32>
    %cst_13 = arith.constant 0.000000e+00 : f32
    %29 = vector.broadcast %cst_13 : f32 to vector<168x196xf32>
    %30 = arith.maximumf %28, %29 : vector<168x196xf32>
    %31 = arith.truncf %30 : vector<168x196xf32> to vector<168x196xbf16>
    %c0_14 = arith.constant 0 : index
    %c0_15 = arith.constant 0 : index
    %32 = vector.load %arg5[%c0_14, %c0_15] : memref<168x196xbf16, #tpu.memory_space<vmem>>, vector<168x196xbf16>
    tpu.vector_store %arg5[%c0_14, %c0_15], %31 {strides = array<i32>} : memref<168x196xbf16, #tpu.memory_space<vmem>>, vector<168x196xbf16>,
    return
  }
  func.func @transform_0(%arg0: i32) -> (i32, i32) {
    %c0_i32 = arith.constant 0 : i32
    %c0_i32_0 = arith.constant 0 : i32
    %c0_i32_1 = arith.constant 0 : i32
    return %c0_i32, %c0_i32_0 : i32, i32
  }
  func.func @transform_1(%arg0: i32) -> (i32, i32) {
    %c0_i32 = arith.constant 0 : i32
    %c0_i32_0 = arith.constant 0 : i32
    return %arg0, %c0_i32 : i32, i32
  }
  func.func @transform_2(%arg0: i32) -> (i32, i32) {
    %c0_i32 = arith.constant 0 : i32
    %c0_i32_0 = arith.constant 0 : i32
    return %arg0, %c0_i32 : i32, i32
  }
  func.func @transform_3(%arg0: i32) -> (i32, i32) {
    %c0_i32 = arith.constant 0 : i32
    %c0_i32_0 = arith.constant 0 : i32
    return %arg0, %c0_i32 : i32, i32
  }
  func.func @transform_4(%arg0: i32) -> (i32, i32) {
    %c0_i32 = arith.constant 0 : i32
    %c0_i32_0 = arith.constant 0 : i32
    return %arg0, %c0_i32 : i32, i32
  }
}

</mosaic_0001>

<bundles_post_ra>
// kernel: tpu_custom_call.1
= control target key start
LH: loop header
LB: loop body
LE: loop exit
PB: predicated region body
PF: predicated region fallthrough
CT: control target
= control target key end

     0   :  { %s2431_s15 = smov 0   ;;  %s3252_s0 = inlined_call_operand.vmem [shape: bf16[336,196], index: 0, kind: input, shape index: {}]   ;;  %s3253_s1 = inlined_call_operand.vmem [shape: bf16[336,336], index: 1, kind: input, shape index: {}]   ;;  %s3254_s2 = inlined_call_operand.vmem [shape: f32[336,1], index: 2, kind: input, shape index: {}]   ;;  %s3255_s3 = inlined_call_operand.vmem [shape: f32[336,1], index: 3, kind: input, shape index: {}]   ;;  %s3256_s4 = inlined_call_operand.vmem [shape: bf16[336,196], index: 4, kind: output, shape index: {}]  }
   0x1 LB: > { %s2054_s16 = sadd.s32 4294967295, %s2403_s15   ;;  %p2058_p0 = scmp.ge.s32.totalorder %s2403_s15, 1  ;;  %s2403_s15 = sphi %s2431_s15, %s14_s15  }
   0x2   : > { %p186_p1 = scmp.lt.s32.totalorder %s2403_s15, 3 }
   0x4   : > { %p187_p2 = pnand %p2058_p0, %p186_p1 }
   0x6   : > { %190 = sbr.rel (%p187_p2) target bundleno = 695 (0x2b7), region = 36 }
   0xd   : > { %v2249_v0 = vld [vmem:[%s3252_s0 + $0x4] ss:$8 sps:$4 sm:$0xff]   ;;  %v2251_v1 = vld [vmem:[%s3252_s0] ss:$8 sps:$4 sm:$0xff]   ;;  %v2405_v2 = vmov 0   ;;  %s224_s7 = smul.u32 21, %s2054_s16 }
   0xe   : > { %912 = vmatprep.mubr.bf16.mxu0 %v2405_v2  ;;  %2247 = vset.pattern.permute.xlu0 %v2405_v2  ;;  %v2252_v3 = vld [vmem:[%s3252_s0 + $0x14] ss:$8 sps:$4 sm:$0xff]   ;;  %v2254_v4 = vld [vmem:[%s3252_s0 + $0x10] ss:$8 sps:$4 sm:$0xff]   ;;  %v2255_v5 = vld [vmem:[%s3252_s0 + $0x24] ss:$8 sps:$4 sm:$0xff]  }
   0xf   : > { %739 = vmatprep.subr.bf16.mxu1 %v2249_v0  ;;  %2248 = vset.pattern.permute.xlu1 %v2405_v2  ;;  %v2257_v6 = vld [vmem:[%s3252_s0 + $0x20] ss:$8 sps:$4 sm:$0xff]   ;;  %v2258_v7 = vld [vmem:[%s3252_s0 + $0x34] ss:$8 sps:$4 sm:$0xff]   ;;  %v2260_v8 = vld [vmem:[%s3252_s0 + $0x30] ss:$8 sps:$4 sm:$0xff]  }
  0x10   : > { %740 = vmatpush1.bf16.msra.mxu1 %v2251_v1  ;;  %v2261_v9 = vld [vmem:[%s3252_s0 + $0x44] ss:$8 sps:$4 sm:$0xff]   ;;  %v2263_v10 = vld [vmem:[%s3252_s0 + $0x40] ss:$8 sps:$4 sm:$0xff]   ;;  %p225_p3 = scmp.lt.s32.totalorder %s224_s7, 41  ;;  %vm705_vm0 = vcmask 654336  }
  0x11   : > { %741 = vmatprep.subr.bf16.mxu1 %v2252_v3  ;;  %v2282_v11 = vld [vmem:[%s3252_s0 + $0x104] ss:$8 sps:$4 sm:$0xff]   ;;  %v2284_v12 = vld [vmem:[%s3252_s0 + $0x100] ss:$8 sps:$4 sm:$0xff]   ;;  %v2264_v13 = vld [vmem:[%s3252_s0 + $0x54] ss:$8 sps:$4 sm:$0xff]  }
  0x12   : > { %880 = vmatprep.subr.bf16.mxu0 %v2282_v11  ;;  %v2288_v14 = vld [vmem:[%s3252_s0 + $0x114] ss:$8 sps:$4 sm:$0xff]   ;;  %v2290_v15 = vld [vmem:[%s3252_s0 + $0x110] ss:$8 sps:$4 sm:$0xff]   ;;  %v2267_v17 = vld [vmem:[%s3252_s0 + $0x64] ss:$8 sps:$4 sm:$0xff]  }
  0x13   : > { %881 = vmatpush1.bf16.msra.mxu0 %v2284_v12  ;;  %v2266_v16 = vld [vmem:[%s3252_s0 + $0x50] ss:$8 sps:$4 sm:$0xff]   ;;  %s3296_s7 = smov (!%p225_p3, %s224_s7), 41  ;;  %v2294_v18 = vld [vmem:[%s3252_s0 + $0x124] ss:$8 sps:$4 sm:$0xff]   ;;  %vm1021_vm1 = vcmask 556032  }
  0x14   : > { %742 = vmatpush1.bf16.msra.mxu1 %v2254_v4  ;;  %882 = vmatprep.subr.bf16.mxu0 %v2288_v14  ;;  %v2296_v19 = vld [vmem:[%s3252_s0 + $0x120] ss:$8 sps:$4 sm:$0xff]   ;;  %v2300_v21 = vld [vmem:[%s3252_s0 + $0x134] ss:$8 sps:$4 sm:$0xff]   ;;  %s2237_s10 = smul.u32 12, %s3296_s7  ;;  %vm1948_vm2 = vcmask 1043456  }
  0x15   : > { %743 = vmatprep.subr.bf16.mxu1 %v2255_v5  ;;  %v2269_v20 = vld [vmem:[%s3252_s0 + $0x60] ss:$8 sps:$4 sm:$0xff]   ;;  %v2270_v22 = vld [vmem:[%s3252_s0 + $0x74] ss:$8 sps:$4 sm:$0xff]   ;;  %v2302_v23 = vld [vmem:[%s3252_s0 + $0x130] ss:$8 sps:$4 sm:$0xff]  }
  0x16   : > { %v2272_v24 = vld [vmem:[%s3252_s0 + $0x70] ss:$8 sps:$4 sm:$0xff]   ;;  %v2306_v25 = vld [vmem:[%s3252_s0 + $0x144] ss:$8 sps:$4 sm:$0xff]   ;;  %s2523_s22 = scalar_lea.vmem %s3253_s1, %s2237_s10  ;;  %v2308_v27 = vld [vmem:[%s3252_s0 + $0x140] ss:$8 sps:$4 sm:$0xff]  }
  0x17   : > { %883 = vmatpush1.bf16.msra.mxu0 %v2290_v15  ;;  %v2273_v26 = vld [vmem:[%s3252_s0 + $0x84] ss:$8 sps:$4 sm:$0xff]   ;;  %v2275_v29 = vld [vmem:[%s3252_s0 + $0x80] ss:$8 sps:$4 sm:$0xff]   ;;  %v2276_v30 = vld [vmem:[%s3252_s0 + $0x94] ss:$8 sps:$4 sm:$0xff]  }
  0x18   : > { %744 = vmatpush1.bf16.msra.mxu1 %v2257_v6  ;;  %884 = vmatprep.subr.bf16.mxu0 %v2294_v18  ;;  %v2315_v28 = vld [vmem:[%s2523_s22 + $0x4] ss:$12 sps:$4 sm:$0xff]   ;;  %v2312_v31 = vld [vmem:[%s2523_s22 + $0x8] ss:$12 sps:$4 sm:$0xff]   ;;  %v2316_v36 = vld [vmem:[%s2523_s22 + $0x20] ss:$12 sps:$4 sm:$0xff]  }
  0x19   : > { %745 = vmatprep.subr.bf16.mxu1 %v2258_v7  ;;  %771 = vmatprep.mubr.bf16.mxu1 %v2315_v28  ;;  %v2278_v32 = vld [vmem:[%s3252_s0 + $0x90] ss:$8 sps:$4 sm:$0xff]   ;;  %v2279_v33 = vld [vmem:[%s3252_s0 + $0xa4] ss:$8 sps:$4 sm:$0xff]   ;;  %v2281_v34 = vld [vmem:[%s3252_s0 + $0xa0] ss:$8 sps:$4 sm:$0xff]  }
  0x1a   : > { %v2285_v35 = vld [vmem:[%s3252_s0 + $0xb4] ss:$8 sps:$4 sm:$0xff]   ;;  %v2287_v37 = vld [vmem:[%s3252_s0 + $0xb0] ss:$8 sps:$4 sm:$0xff]   ;;  %v2291_v38 = vld [vmem:[%s3252_s0 + $0xc4] ss:$8 sps:$4 sm:$0xff]  }
  0x1b   : > { %885 = vmatpush1.bf16.msra.mxu0 %v2296_v19  ;;  %v2293_v39 = vld [vmem:[%s3252_s0 + $0xc0] ss:$8 sps:$4 sm:$0xff]   ;;  %v2297_v40 = vld [vmem:[%s3252_s0 + $0xd4] ss:$8 sps:$4 sm:$0xff]   ;;  %v2323_v41 = vld [vmem:[%s2523_s22 + $0x38] ss:$12 sps:$4 sm:$0xff]  }
  0x1c   : > { %746 = vmatpush1.bf16.msra.mxu1 %v2260_v8  ;;  %886 = vmatprep.subr.bf16.mxu0 %v2300_v21  ;;  %v2299_v42 = vld [vmem:[%s3252_s0 + $0xd0] ss:$8 sps:$4 sm:$0xff]   ;;  %v2303_v43 = vld [vmem:[%s3252_s0 + $0xe4] ss:$8 sps:$4 sm:$0xff]   ;;  %v2305_v44 = vld [vmem:[%s3252_s0 + $0xe0] ss:$8 sps:$4 sm:$0xff]  }
  0x1d   : > { %747 = vmatprep.subr.bf16.mxu1 %v2261_v9  ;;  %v2309_v45 = vld [vmem:[%s3252_s0 + $0xf4] ss:$8 sps:$4 sm:$0xff]   ;;  %v2311_v47 = vld [vmem:[%s3252_s0 + $0xf0] ss:$8 sps:$4 sm:$0xff]   ;;  %v2313_v48 = vld [vmem:[%s2523_s22] ss:$12 sps:$4 sm:$0xff]  }
  0x1e   : > { %v2327_v46 = vld [vmem:[%s2523_s22 + $0x50] ss:$12 sps:$4 sm:$0xff]   ;;  %v2331_v50 = vld [vmem:[%s2523_s22 + $0x68] ss:$12 sps:$4 sm:$0xff]   ;;  %v2319_v51 = vld [vmem:[%s2523_s22 + $0x18] ss:$12 sps:$4 sm:$0xff]  }
  0x1f   : > { %887 = vmatpush1.bf16.msra.mxu0 %v2302_v23  ;;  %v2317_v49 = vld [vmem:[%s2523_s22 + $0x1c] ss:$12 sps:$4 sm:$0xff]   ;;  %v2320_v52 = vld [vmem:[%s2523_s22 + $0x34] ss:$12 sps:$4 sm:$0xff]   ;;  %v2324_v55 = vld [vmem:[%s2523_s22 + $0x4c] ss:$12 sps:$4 sm:$0xff]  }
  0x20   : > { %748 = vmatpush1.bf16.msra.mxu1 %v2263_v10  ;;  %888 = vmatprep.subr.bf16.mxu0 %v2306_v25  ;;  %v2335_v53 = vld [vmem:[%s2523_s22 + $0x80] ss:$12 sps:$4 sm:$0xff]   ;;  %v2322_v54 = vld [vmem:[%s2523_s22 + $0x30] ss:$12 sps:$4 sm:$0xff]   ;;  %v2339_v56 = vld [vmem:[%s2523_s22 + $0x98] ss:$12 sps:$4 sm:$0xff]  }
  0x21   : > { %749 = vmatprep.subr.bf16.mxu1 %v2264_v13  ;;  %v2326_v57 = vld [vmem:[%s2523_s22 + $0x48] ss:$12 sps:$4 sm:$0xff]   ;;  %v2328_v58 = vld [vmem:[%s2523_s22 + $0x64] ss:$12 sps:$4 sm:$0xff]   ;;  %v2330_v60 = vld [vmem:[%s2523_s22 + $0x60] ss:$12 sps:$4 sm:$0xff]  }
  0x22   : > { %v2343_v59 = vld [vmem:[%s2523_s22 + $0xb0] ss:$12 sps:$4 sm:$0xff]   ;;  %v2347_v62 = vld [vmem:[%s2523_s22 + $0xc8] ss:$12 sps:$4 sm:$0xff]   ;;  %v2334_v63 = vld [vmem:[%s2523_s22 + $0x78] ss:$12 sps:$4 sm:$0xff]  }
  0x23   : > { %889 = vmatpush1.bf16.msra.mxu0 %v2308_v27  ;;  %v2332_v61 = vld [vmem:[%s2523_s22 + $0x7c] ss:$12 sps:$4 sm:$0xff]   ;;  %v2336_v0 = vld [vmem:[%s2523_s22 + $0x94] ss:$12 sps:$4 sm:$0xff]   ;;  %v2340_v4 = vld [vmem:[%s2523_s22 + $0xac] ss:$12 sps:$4 sm:$0xff]  }
  0x24   : > { %750 = vmatpush1.bf16.msra.mxu1 %v2266_v16  ;;  %v2351_v1 = vld [vmem:[%s2523_s22 + $0xe0] ss:$12 sps:$4 sm:$0xff]   ;;  %v2338_v3 = vld [vmem:[%s2523_s22 + $0x90] ss:$12 sps:$4 sm:$0xff]   ;;  %v2354_v5 = vld [vmem:[%s2523_s22 + $0xf8] ss:$0 sps:$4 sm:$0xff]  }
  0x25   : > { %751 = vmatprep.subr.bf16.mxu1 %v2267_v17  ;;  %v2342_v6 = vld [vmem:[%s2523_s22 + $0xa8] ss:$12 sps:$4 sm:$0xff]   ;;  %v2344_v7 = vld [vmem:[%s2523_s22 + $0xc4] ss:$12 sps:$4 sm:$0xff]   ;;  %v2346_v8 = vld [vmem:[%s2523_s22 + $0xc0] ss:$12 sps:$4 sm:$0xff]  }
  0x26   : > { %2139 = vmatmul.mubr.msk.bf16.vlgmr.msra.gmra.mrb[0].mxu0 %vm705_vm0, %v2312_v31  ;;  %v2348_v9 = vld [vmem:[%s2523_s22 + $0xdc] ss:$12 sps:$4 sm:$0xff]   ;;  %v291_v10 = vld [vmem:[%s2523_s22 + $0xf0] sm:$0xff]  ;;  %v2350_v11 = vld [vmem:[%s2523_s22 + $0xd8] ss:$12 sps:$4 sm:$0xff]   ;;  %s2984_s22 = sshll.u32 %s3296_s7, 3 }
  0x27   : > { %922 = vmatprep.mubr.bf16.mxu0 %v2405_v2  ;;  %v2095_v12 = vcombine.high %v291_v10, %v291_v10  ;;  %s2994_s11 = scalar_lea.vmem %s3254_s2, %s2984_s22  ;;  %s3005_s13 = scalar_lea.vmem %s3255_s3, %s2984_s22  ;;  %vm1949_vm3 = vcmask 556036  }
  0x28   : > { %752 = vmatpush1.bf16.msra.mxu1 %v2269_v20  ;;  %s3140_s16 = scalar_lea.vmem %s3256_s4, %s2984_s22  ;;  %vm3142_vm4 = vmor %vm1949_vm3, %vm1948_vm2 }
  0x29   : > { %753 = vmatprep.subr.bf16.mxu1 %v2270_v22 }
  0x2c   : > { %754 = vmatpush1.bf16.msra.mxu1 %v2272_v24 }
  0x2d   : > { %755 = vmatprep.subr.bf16.mxu1 %v2273_v26 }
  0x2e   : > { %2140 = vmatmul.mubr.msk.bf16.gmra.mrb[4].mxu0 %vm705_vm0, %v2316_v36 }
  0x2f   : > { %932 = vmatprep.mubr.bf16.mxu0 %v2405_v2 }
  0x30   : > { %756 = vmatpush1.bf16.msra.mxu1 %v2275_v29 }
  0x31   : > { %757 = vmatprep.subr.bf16.mxu1 %v2276_v30 }
  0x34   : > { %758 = vmatpush1.bf16.msra.mxu1 %v2278_v32 }
  0x35   : > { %759 = vmatprep.subr.bf16.mxu1 %v2279_v33 }
  0x36   : > { %2141 = vmatmul.mubr.msk.bf16.gmra.mrb[8].mxu0 %vm705_vm0, %v2323_v41 }
  0x37   : > { %942 = vmatprep.mubr.bf16.mxu0 %v2405_v2 }
  0x38   : > { %760 = vmatpush1.bf16.msra.mxu1 %v2281_v34 }
  0x39   : > { %761 = vmatprep.subr.bf16.mxu1 %v2285_v35 }
  0x3c   : > { %762 = vmatpush1.bf16.msra.mxu1 %v2287_v37 }
  0x3d   : > { %763 = vmatprep.subr.bf16.mxu1 %v2291_v38 }
  0x3e   : > { %2142 = vmatmul.mubr.msk.bf16.gmra.mrb[12].mxu0 %vm705_vm0, %v2327_v46 }
  0x3f   : > { %952 = vmatprep.mubr.bf16.mxu0 %v2405_v2 }
  0x40   : > { %764 = vmatpush1.bf16.msra.mxu1 %v2293_v39 }
  0x41   : > { %765 = vmatprep.subr.bf16.mxu1 %v2297_v40 }
  0x44   : > { %766 = vmatpush1.bf16.msra.mxu1 %v2299_v42 }
  0x45   : > { %767 = vmatprep.subr.bf16.mxu1 %v2303_v43 }
  0x46   : > { %2143 = vmatmul.mubr.msk.bf16.gmra.mrb[16].mxu0 %vm705_vm0, %v2331_v50 }
  0x47   : > { %962 = vmatprep.mubr.bf16.mxu0 %v2405_v2 }
  0x48   : > { %768 = vmatpush1.bf16.msra.mxu1 %v2305_v44 }
  0x49   : > { %769 = vmatprep.subr.bf16.mxu1 %v2309_v45 }
  0x4c   : > { %770 = vmatpush1.bf16.msra.mxu1 %v2311_v47 }
  0x4e   : > { %2144 = vmatmul.mubr.msk.bf16.gmra.mrb[20].mxu0 %vm705_vm0, %v2335_v53 }
  0x4f   : > { %772 = vmatmul.mubr.bf16.vlgmr.msra.gmra.mrb[0].mxu1 %v2313_v48  ;;  %972 = vmatprep.mubr.bf16.mxu0 %v2405_v2 }
  0x50   : > { %781 = vmatprep.mubr.bf16.mxu1 %v2317_v49 }
  0x56   : > { %2145 = vmatmul.mubr.msk.bf16.gmra.mrb[24].mxu0 %vm705_vm0, %v2339_v56 }
  0x57   : > { %782 = vmatmul.mubr.bf16.gmra.mrb[4].mxu1 %v2319_v51  ;;  %982 = vmatprep.mubr.bf16.mxu0 %v2405_v2 }
  0x58   : > { %791 = vmatprep.mubr.bf16.mxu1 %v2320_v52 }
  0x5e   : > { %2146 = vmatmul.mubr.msk.bf16.gmra.mrb[28].mxu0 %vm705_vm0, %v2343_v59 }
  0x5f   : > { %792 = vmatmul.mubr.bf16.gmra.mrb[8].mxu1 %v2322_v54  ;;  %992 = vmatprep.mubr.bf16.mxu0 %v2405_v2 }
  0x60   : > { %801 = vmatprep.mubr.bf16.mxu1 %v2324_v55 }
  0x66   : > { %2147 = vmatmul.mubr.msk.bf16.gmra.mrb[32].mxu0 %vm705_vm0, %v2347_v62 }
  0x67   : > { %802 = vmatmul.mubr.bf16.gmra.mrb[12].mxu1 %v2326_v57  ;;  %1002 = vmatprep.mubr.bf16.mxu0 %v2405_v2 }
  0x68   : > { %811 = vmatprep.mubr.bf16.mxu1 %v2328_v58 }
  0x6e   : > { %2148 = vmatmul.mubr.msk.bf16.gmra.mrb[36].mxu0 %vm705_vm0, %v2351_v1 }
  0x6f   : > { %812 = vmatmul.mubr.bf16.gmra.mrb[16].mxu1 %v2330_v60  ;;  %1012 = vmatprep.mubr.bf16.mxu0 %v2405_v2  ;;  %v2094_v2 = vcombine.low %v291_v10, %v291_v10 }
  0x70   : > { %821 = vmatprep.mubr.bf16.mxu1 %v2332_v61 }
  0x76   : > { %2149 = vmatmul.mubr.msk.bf16.gmra.mrb[40].mxu0 %vm705_vm0, %v2354_v5 }
  0x77   : > { %822 = vmatmul.mubr.bf16.gmra.mrb[20].mxu1 %v2334_v63 }
  0x78   : > { %831 = vmatprep.mubr.bf16.mxu1 %v2336_v0 }
  0x7f   : > { %832 = vmatmul.mubr.bf16.gmra.mrb[24].mxu1 %v2338_v3 }
  0x80   : > { %841 = vmatprep.mubr.bf16.mxu1 %v2340_v4 }
  0x87   : > { %842 = vmatmul.mubr.bf16.gmra.mrb[28].mxu1 %v2342_v6 }
  0x88   : > { %851 = vmatprep.mubr.bf16.mxu1 %v2344_v7 }
  0x8f   : > { %852 = vmatmul.mubr.bf16.gmra.mrb[32].mxu1 %v2346_v8 }
  0x90   : > { %861 = vmatprep.mubr.bf16.mxu1 %v2348_v9 }
  0x97   : > { %862 = vmatmul.mubr.bf16.gmra.mrb[36].mxu1 %v2350_v11 }
  0x98   : > { %871 = vmatprep.mubr.bf16.mxu1 %v2095_v12 }
  0x9f   : > { %872 = vmatmul.mubr.bf16.gmra.mrb[40].mxu1 %v2094_v2 }
  0xf9   : > { %v914_v13 = vpop.f32.mrb[0].mxu0 }
  0xfa   : > { %v916_v14 = vpop.f32.mrb[1].mxu0 }
  0xfb   : > { %v918_v15 = vpop.f32.mrb[2].mxu0 }
  0xfc   : > { %v920_v16 = vpop.f32.mrb[3].mxu0 }
 0x101   : > { %v924_v17 = vpop.f32.mrb[4].mxu0 }
 0x102   : > { %v926_v18 = vpop.f32.mrb[5].mxu0 }
 0x103   : > { %v928_v19 = vpop.f32.mrb[6].mxu0 }
 0x104   : > { %v930_v20 = vpop.f32.mrb[7].mxu0 }
 0x109   : > { %v934_v21 = vpop.f32.mrb[8].mxu0 }
 0x10a   : > { %v936_v22 = vpop.f32.mrb[9].mxu0 }
 0x10b   : > { %v2629_v23 = vpop.f32.mrb[10].mxu0 }
 0x10c   : > { %v2631_v24 = vpop.f32.mrb[11].mxu0 }
 0x111   : > { %v2633_v25 = vpop.f32.mrb[12].mxu0 }
 0x112   : > { %v2635_v26 = vpop.f32.mrb[13].mxu0 }
 0x113   : > { %v2637_v27 = vpop.f32.mrb[14].mxu0 }
 0x114   : > { %v2639_v28 = vpop.f32.mrb[15].mxu0 }
 0x119   : > { %v2647_v36 = vpop.f32.mrb[16].mxu0 }
 0x11a   : > { %v2655_v40 = vpop.f32.mrb[17].mxu0 }
 0x11b   : > { %v2660_v43 = vpop.f32.mrb[18].mxu0 }
 0x11c   : > { %v2667_v47 = vpop.f32.mrb[19].mxu0 }
 0x121   : > { %v2679_v59 = vpop.f32.mrb[20].mxu0 }
 0x122   : > { %v773_v29 = vpop.f32.mrb[0].mxu1  ;;  %v2685_v62 = vpop.f32.mrb[21].mxu0 }
 0x123   : > { %v2641_v30 = vadd.f32 %v914_v13, %v773_v29  ;;  %v775_v31 = vpop.f32.mrb[1].mxu1  ;;  %v2688_v1 = vpop.f32.mrb[22].mxu0 }
 0x124   : > { %v2643_v32 = vadd.f32 %v916_v14, %v775_v31  ;;  %v777_v33 = vpop.f32.mrb[2].mxu1  ;;  %v2696_v6 = vpop.f32.mrb[23].mxu0 }
 0x125   : > { %v2645_v34 = vadd.f32 %v918_v15, %v777_v33  ;;  %v779_v35 = vpop.f32.mrb[3].mxu1  ;;  %v1106_v42 = vmul.f32 %v2641_v30, %v2641_v30 }
 0x126   : > { %v2649_v37 = vadd.f32 %v920_v16, %v779_v35  ;;  %v1022_v38 = vsel %vm1021_vm1, %v2643_v32, 0.0  ;;  %v1107_v39 = vmul.f32 %v2643_v32, %v2643_v32 }
 0x127   : > { %v1023_v41 = vadd.f32 %v1022_v38, %v2641_v30  ;;  %v1108_v58 = vmul.f32 %v2645_v34, %v2645_v34 }
 0x128   : > { %v1148_v44 = vsel %vm1021_vm1, %v1107_v39, 0.0  ;;  %v1026_v45 = vsel %vm1021_vm1, %v2649_v37, 0.0  ;;  %v1109_v46 = vmul.f32 %v2649_v37, %v2649_v37 }
 0x129   : > { %1024 = vadd.xlane.f32.xlu0 %v1023_v41  ;;  %v1149_v48 = vadd.f32 %v1148_v44, %v1106_v42  ;;  %v1027_v52 = vadd.f32 %v1026_v45, %v2645_v34 }
 0x12a   : > { %v783_v49 = vpop.f32.mrb[4].mxu1  ;;  %v1152_v55 = vsel %vm1021_vm1, %v1109_v46, 0.0 }
 0x12b   : > { %v2669_v50 = vadd.f32 %v924_v17, %v783_v49  ;;  %1150 = vadd.xlane.f32.xlu1 %v1149_v48  ;;  %v785_v51 = vpop.f32.mrb[5].mxu1  ;;  %v1153_v63 = vadd.f32 %v1152_v55, %v1108_v58 }
 0x12c   : > { %v2672_v53 = vadd.f32 %v926_v18, %v785_v51  ;;  %v787_v54 = vpop.f32.mrb[6].mxu1 }
 0x12d   : > { %v2675_v56 = vadd.f32 %v928_v19, %v787_v54  ;;  %1028 = vadd.xlane.f32.xlu0 %v1027_v52  ;;  %v789_v57 = vpop.f32.mrb[7].mxu1  ;;  %v1110_v18 = vmul.f32 %v2669_v50, %v2669_v50  ;;  %v2712_v19 = vpop.f32.mrb[24].mxu0 }
 0x12e   : > { %v2681_v60 = vadd.f32 %v930_v20, %v789_v57  ;;  %v1030_v61 = vsel %vm1021_vm1, %v2672_v53, 0.0  ;;  %v1111_v5 = vmul.f32 %v2672_v53, %v2672_v53 }
 0x12f   : > { %v1031_v0 = vadd.f32 %v1030_v61, %v2669_v50  ;;  %v1112_v7 = vmul.f32 %v2675_v56, %v2675_v56 }
 0x130   : > { %v1113_v3 = vmul.f32 %v2681_v60, %v2681_v60  ;;  %v1034_v4 = vsel %vm1021_vm1, %v2681_v60, 0.0  ;;  %v1156_v15 = vsel %vm1021_vm1, %v1111_v5, 0.0 }
 0x131   : > { %1154 = vadd.xlane.f32.xlu0 %v1153_v63  ;;  %1032 = vadd.xlane.f32.xlu1 %v1031_v0  ;;  %v1035_v12 = vadd.f32 %v1034_v4, %v2675_v56  ;;  %v1157_v29 = vadd.f32 %v1156_v15, %v1110_v18 }
 0x132   : > { %v793_v8 = vpop.f32.mrb[8].mxu1  ;;  %v1160_v9 = vsel %vm1021_vm1, %v1113_v3, 0.0 }
 0x133   : > { %v2701_v10 = vadd.f32 %v934_v21, %v793_v8  ;;  %v1161_v11 = vadd.f32 %v1160_v9, %v1112_v7  ;;  %v795_v2 = vpop.f32.mrb[9].mxu1 }
 0x134   : > { %v2704_v13 = vadd.f32 %v936_v22, %v795_v2  ;;  %v797_v14 = vpop.f32.mrb[10].mxu1  ;;  %v2719_v22 = vpop.f32.mrb[25].mxu0 }
 0x135   : > { %1162 = vadd.xlane.f32.xlu0 %v1161_v11  ;;  %1036 = vadd.xlane.f32.xlu1 %v1035_v12  ;;  %v2708_v16 = vadd.f32 %v2629_v23, %v797_v14  ;;  %v799_v17 = vpop.f32.mrb[11].mxu1  ;;  %v2724_v33 = vpop.f32.mrb[26].mxu0  ;;  %v1114_v49 = vmul.f32 %v2701_v10, %v2701_v10 }
 0x136   : > { %v2715_v20 = vadd.f32 %v2631_v24, %v799_v17  ;;  %v1038_v21 = vsel %vm1021_vm1, %v2704_v13, 0.0  ;;  %v1115_v38 = vmul.f32 %v2704_v13, %v2704_v13  ;;  %v2732_v39 = vpop.f32.mrb[27].mxu0 }
 0x137   : > { %v1039_v31 = vadd.f32 %v1038_v21, %v2701_v10  ;;  %v1116_v23 = vmul.f32 %v2708_v16, %v2708_v16  ;;  %v2748_v58 = vpop.f32.mrb[28].mxu0 }
 0x138   : > { %v1042_v35 = vsel %vm1021_vm1, %v2715_v20, 0.0  ;;  %v1117_v24 = vmul.f32 %v2715_v20, %v2715_v20  ;;  %v1164_v54 = vsel %vm1021_vm1, %v1115_v38, 0.0  ;;  %v2757_v63 = vpop.f32.mrb[29].mxu0 }
 0x139   : > { %1158 = vadd.xlane.f32.xlu1 %v1157_v29  ;;  %1040 = vadd.xlane.f32.xlu0 %v1039_v31  ;;  %v1043_v41 = vadd.f32 %v1042_v35, %v2708_v16  ;;  %v1165_v0 = vadd.f32 %v1164_v54, %v1114_v49  ;;  %v2762_v4 = vpop.f32.mrb[30].mxu0 }
 0x13a   : > { %v803_v42 = vpop.f32.mrb[12].mxu1  ;;  %v1168_v44 = vsel %vm1021_vm1, %v1117_v24, 0.0  ;;  %v2768_v7 = vpop.f32.mrb[31].mxu0 }
 0x13b   : > { %v2737_v45 = vadd.f32 %v2633_v25, %v803_v42  ;;  %v805_v46 = vpop.f32.mrb[13].mxu1  ;;  %v1169_v48 = vadd.f32 %v1168_v44, %v1116_v23  ;;  %v2784_v35 = vpop.f32.mrb[32].mxu0 }
 0x13c   : > { %v2742_v51 = vadd.f32 %v2635_v26, %v805_v46  ;;  %v807_v52 = vpop.f32.mrb[14].mxu1  ;;  %v2793_v38 = vpop.f32.mrb[33].mxu0 }
 0x13d   : > { %1044 = vadd.xlane.f32.xlu1 %v1043_v41  ;;  %v2746_v55 = vadd.f32 %v2637_v27, %v807_v52  ;;  %1170 = vadd.xlane.f32.xlu0 %v1169_v48  ;;  %v809_v57 = vpop.f32.mrb[15].mxu1  ;;  %v1118_v9 = vmul.f32 %v2737_v45, %v2737_v45  ;;  %v2798_v42 = vpop.f32.mrb[34].mxu0 }
 0x13e   : > { %v2751_v25 = vadd.f32 %v2639_v28, %v809_v57  ;;  %v1046_v61 = vsel %vm1021_vm1, %v2742_v51, 0.0  ;;  %v1119_v26 = vmul.f32 %v2742_v51, %v2742_v51  ;;  %v2804_v46 = vpop.f32.mrb[35].mxu0 }
 0x13f   : > { %v1047_v3 = vadd.f32 %v1046_v61, %v2737_v45  ;;  %v1120_v27 = vmul.f32 %v2746_v55, %v2746_v55 }
 0x140   : > { %v1050_v28 = vsel %vm1021_vm1, %v2751_v25, 0.0  ;;  %v1121_v5 = vmul.f32 %v2751_v25, %v2751_v25  ;;  %v1172_v2 = vsel %vm1021_vm1, %v1119_v26, 0.0 }
 0x141   : > { %1166 = vadd.xlane.f32.xlu1 %v1165_v0  ;;  %1048 = vadd.xlane.f32.xlu0 %v1047_v3  ;;  %v1051_v8 = vadd.f32 %v1050_v28, %v2746_v55  ;;  %v1173_v23 = vadd.f32 %v1172_v2, %v1118_v9  ;;  %v2820_v9 = vpop.f32.mrb[36].mxu0 }
 0x142   : > { %v813_v11 = vpop.f32.mrb[16].mxu1  ;;  %v1176_v12 = vsel %vm1021_vm1, %v1121_v5, 0.0 }
 0x143   : > { %v2776_v14 = vadd.f32 %v2647_v36, %v813_v11  ;;  %v815_v15 = vpop.f32.mrb[17].mxu1  ;;  %v1177_v17 = vadd.f32 %v1176_v12, %v1120_v27  ;;  %v2829_v12 = vpop.f32.mrb[37].mxu0 }
 0x144   : > { %v2779_v18 = vadd.f32 %v2655_v40, %v815_v15  ;;  %v817_v21 = vpop.f32.mrb[18].mxu1  ;;  %v2834_v15 = vpop.f32.mrb[38].mxu0 }
 0x145   : > { %1052 = vadd.xlane.f32.xlu1 %v1051_v8  ;;  %v2782_v29 = vadd.f32 %v2660_v43, %v817_v21  ;;  %1178 = vadd.xlane.f32.xlu0 %v1177_v17  ;;  %v819_v31 = vpop.f32.mrb[19].mxu1  ;;  %v1122_v49 = vmul.f32 %v2776_v14, %v2776_v14  ;;  %v2840_v21 = vpop.f32.mrb[39].mxu0 }
 0x146   : > { %v2787_v24 = vadd.f32 %v2667_v47, %v819_v31  ;;  %v1054_v36 = vsel %vm1021_vm1, %v2779_v18, 0.0  ;;  %v1123_v40 = vmul.f32 %v2779_v18, %v2779_v18 }
 0x147   : > { %v1055_v41 = vadd.f32 %v1054_v36, %v2776_v14  ;;  %v1124_v43 = vmul.f32 %v2782_v29, %v2782_v29 }
 0x148   : > { %v1058_v44 = vsel %vm1021_vm1, %v2787_v24, 0.0  ;;  %v1125_v47 = vmul.f32 %v2787_v24, %v2787_v24  ;;  %v1180_v57 = vsel %vm1021_vm1, %v1123_v40, 0.0 }
 0x149   : > { %1174 = vadd.xlane.f32.xlu1 %v1173_v23  ;;  %1056 = vadd.xlane.f32.xlu0 %v1055_v41  ;;  %v1059_v48 = vadd.f32 %v1058_v44, %v2782_v29  ;;  %v1181_v8 = vadd.f32 %v1180_v57, %v1122_v49 }
 0x14a   : > { %v823_v52 = vpop.f32.mrb[20].mxu1  ;;  %v1184_v54 = vsel %vm1021_vm1, %v1125_v47, 0.0 }
 0x14b   : > { %v2812_v61 = vadd.f32 %v2679_v59, %v823_v52  ;;  %v825_v26 = vpop.f32.mrb[21].mxu1  ;;  %v1185_v0 = vadd.f32 %v1184_v54, %v1124_v43 }
 0x14c   : > { %v2815_v3 = vadd.f32 %v2685_v62, %v825_v26  ;;  %v827_v27 = vpop.f32.mrb[22].mxu1  ;;  %v2856_v26 = vpop.f32.mrb[40].mxu0 }
 0x14d   : > { %1060 = vadd.xlane.f32.xlu1 %v1059_v48  ;;  %v2818_v28 = vadd.f32 %v2688_v1, %v827_v27  ;;  %1186 = vadd.xlane.f32.xlu0 %v1185_v0  ;;  %v829_v5 = vpop.f32.mrb[23].mxu1  ;;  %v1126_v23 = vmul.f32 %v2812_v61, %v2812_v61  ;;  %v2865_v27 = vpop.f32.mrb[41].mxu0 }
 0x14e   : > { %v2823_v11 = vadd.f32 %v2696_v6, %v829_v5  ;;  %v1062_v59 = vsel %vm1021_vm1, %v2815_v3, 0.0  ;;  %v1127_v62 = vmul.f32 %v2815_v3, %v2815_v3 }
 0x14f   : > { %v1063_v2 = vadd.f32 %v1062_v59, %v2812_v61  ;;  %v1128_v1 = vmul.f32 %v2818_v28, %v2818_v28 }
 0x150   : > { %v1066_v17 = vsel %vm1021_vm1, %v2823_v11, 0.0  ;;  %v1129_v6 = vmul.f32 %v2823_v11, %v2823_v11  ;;  %v1188_v41 = vsel %vm1021_vm1, %v1127_v62, 0.0 }
 0x151   : > { %1182 = vadd.xlane.f32.xlu1 %v1181_v8  ;;  %1064 = vadd.xlane.f32.xlu0 %v1063_v2  ;;  %v1067_v31 = vadd.f32 %v1066_v17, %v2818_v28  ;;  %v1189_v57 = vadd.f32 %v1188_v41, %v1126_v23  ;;  %v1018_v8 = vpop.f32.mrb[42].mxu0 }
 0x152   : > { %v833_v36 = vpop.f32.mrb[24].mxu1  ;;  %v1192_v40 = vsel %vm1021_vm1, %v1129_v6, 0.0  ;;  %v1019_v62 = vpop.f32.mrb[43].mxu0 }
 0x153   : > { %v2848_v43 = vadd.f32 %v2712_v19, %v833_v36  ;;  %v835_v44 = vpop.f32.mrb[25].mxu1  ;;  %v1193_v47 = vadd.f32 %v1192_v40, %v1128_v1 }
 0x154   : > { %v2851_v48 = vadd.f32 %v2719_v22, %v835_v44  ;;  %v837_v49 = vpop.f32.mrb[26].mxu1 }
 0x155   : > { %1068 = vadd.xlane.f32.xlu1 %v1067_v31  ;;  %v2854_v52 = vadd.f32 %v2724_v33, %v837_v49  ;;  %1194 = vadd.xlane.f32.xlu0 %v1193_v47  ;;  %v839_v54 = vpop.f32.mrb[27].mxu1  ;;  %v1130_v1 = vmul.f32 %v2848_v43, %v2848_v43 }
 0x156   : > { %v2859_v0 = vadd.f32 %v2732_v39, %v839_v54  ;;  %v1070_v19 = vsel %vm1021_vm1, %v2851_v48, 0.0  ;;  %v1131_v22 = vmul.f32 %v2851_v48, %v2851_v48 }
 0x157   : > { %v1071_v5 = vadd.f32 %v1070_v19, %v2848_v43  ;;  %v1132_v33 = vmul.f32 %v2854_v52, %v2854_v52 }
 0x158   : > { %v1074_v59 = vsel %vm1021_vm1, %v2859_v0, 0.0  ;;  %v1133_v39 = vmul.f32 %v2859_v0, %v2859_v0  ;;  %v1196_v31 = vsel %vm1021_vm1, %v1131_v22, 0.0 }
 0x159   : > { %1190 = vadd.xlane.f32.xlu1 %v1189_v57  ;;  %1072 = vadd.xlane.f32.xlu0 %v1071_v5  ;;  %v1075_v2 = vadd.f32 %v1074_v59, %v2854_v52  ;;  %v1197_v54 = vadd.f32 %v1196_v31, %v1130_v1 }
 0x15a   : > { %v843_v17 = vpop.f32.mrb[28].mxu1  ;;  %v1200_v6 = vsel %vm1021_vm1, %v1133_v39, 0.0 }
 0x15b   : > { %v2880_v23 = vadd.f32 %v2748_v58, %v843_v17  ;;  %v845_v36 = vpop.f32.mrb[29].mxu1  ;;  %v1201_v40 = vadd.f32 %v1200_v6, %v1132_v33 }
 0x15c   : > { %v2883_v41 = vadd.f32 %v2757_v63, %v845_v36  ;;  %v847_v44 = vpop.f32.mrb[30].mxu1 }
 0x15d   : > { %1076 = vadd.xlane.f32.xlu1 %v1075_v2  ;;  %v2886_v47 = vadd.f32 %v2762_v4, %v847_v44  ;;  %1202 = vadd.xlane.f32.xlu0 %v1201_v40  ;;  %v849_v49 = vpop.f32.mrb[31].mxu1  ;;  %v1134_v33 = vmul.f32 %v2880_v23, %v2880_v23 }
 0x15e   : > { %v2889_v57 = vadd.f32 %v2768_v7, %v849_v49  ;;  %v1078_v58 = vsel %vm1021_vm1, %v2883_v41, 0.0  ;;  %v1135_v19 = vmul.f32 %v2883_v41, %v2883_v41 }
 0x15f   : > { %3269 = vst [vmem:[#allocation2_spill] sm:$0xff] %v2886_v47  ;;  %v1079_v63 = vadd.f32 %v1078_v58, %v2880_v23  ;;  %v1136_v22 = vmul.f32 %v2886_v47, %v2886_v47 }
 0x160   : > { %3270 = vst [vmem:[#allocation3_spill] sm:$0xff] %v2889_v57  ;;  %v1082_v4 = vsel %vm1021_vm1, %v2889_v57, 0.0  ;;  %v1137_v5 = vmul.f32 %v2889_v57, %v2889_v57  ;;  %v1204_v39 = vsel %vm1021_vm1, %v1135_v19, 0.0 }
 0x161   : > { %1198 = vadd.xlane.f32.xlu1 %v1197_v54  ;;  %1080 = vadd.xlane.f32.xlu0 %v1079_v63  ;;  %v1083_v7 = vadd.f32 %v1082_v4, %v2886_v47  ;;  %v1205_v40 = vadd.f32 %v1204_v39, %v1134_v33 }
 0x162   : > { %v853_v8 = vpop.f32.mrb[32].mxu1  ;;  %v1208_v59 = vsel %vm1021_vm1, %v1137_v5, 0.0 }
 0x163   : > { %v2908_v62 = vadd.f32 %v2784_v35, %v853_v8  ;;  %v855_v2 = vpop.f32.mrb[33].mxu1  ;;  %v1209_v1 = vadd.f32 %v1208_v59, %v1136_v22 }
 0x164   : > { %v2911_v17 = vadd.f32 %v2793_v38, %v855_v2  ;;  %v857_v6 = vpop.f32.mrb[34].mxu1 }
 0x165   : > { %3271 = vst [vmem:[#allocation4_spill] sm:$0xff] %v2908_v62  ;;  %1084 = vadd.xlane.f32.xlu1 %v1083_v7  ;;  %v2914_v31 = vadd.f32 %v2798_v42, %v857_v6  ;;  %1210 = vadd.xlane.f32.xlu0 %v1209_v1  ;;  %v859_v36 = vpop.f32.mrb[35].mxu1  ;;  %v1138_v19 = vmul.f32 %v2908_v62, %v2908_v62 }
 0x166   : > { %3272 = vst [vmem:[#allocation5_spill] sm:$0xff] %v2911_v17  ;;  %v2917_v44 = vadd.f32 %v2804_v46, %v859_v36  ;;  %v1086_v35 = vsel %vm1021_vm1, %v2911_v17, 0.0  ;;  %v1139_v49 = vmul.f32 %v2911_v17, %v2911_v17 }
 0x167   : > { %3273 = vst [vmem:[#allocation6_spill] sm:$0xff] %v2914_v31  ;;  %v1087_v38 = vadd.f32 %v1086_v35, %v2908_v62  ;;  %v1140_v54 = vmul.f32 %v2914_v31, %v2914_v31 }
 0x168   : > { %3274 = vst [vmem:[#allocation7_spill] sm:$0xff] %v2917_v44  ;;  %v1090_v42 = vsel %vm1021_vm1, %v2917_v44, 0.0  ;;  %v1141_v58 = vmul.f32 %v2917_v44, %v2917_v44  ;;  %v1212_v4 = vsel %vm1021_vm1, %v1139_v49, 0.0 }
 0x169   : > { %1206 = vadd.xlane.f32.xlu1 %v1205_v40  ;;  %1088 = vadd.xlane.f32.xlu0 %v1087_v38  ;;  %v1091_v46 = vadd.f32 %v1090_v42, %v2914_v31  ;;  %v1213_v1 = vadd.f32 %v1212_v4, %v1138_v19 }
 0x16a   : > { %v863_v63 = vpop.f32.mrb[36].mxu1  ;;  %v1216_v22 = vsel %vm1021_vm1, %v1141_v58, 0.0 }
 0x16b   : > { %v2936_v5 = vadd.f32 %v2820_v9, %v863_v63  ;;  %v865_v7 = vpop.f32.mrb[37].mxu1  ;;  %v1217_v33 = vadd.f32 %v1216_v22, %v1140_v54 }
 0x16c   : > { %v2939_v8 = vadd.f32 %v2829_v12, %v865_v7  ;;  %v867_v59 = vpop.f32.mrb[38].mxu1 }
 0x16d   : > { %3275 = vst [vmem:[#allocation8_spill] sm:$0xff] %v2936_v5  ;;  %1092 = vadd.xlane.f32.xlu1 %v1091_v46  ;;  %v2942_v39 = vadd.f32 %v2834_v15, %v867_v59  ;;  %1218 = vadd.xlane.f32.xlu0 %v1217_v33  ;;  %v869_v2 = vpop.f32.mrb[39].mxu1  ;;  %v1142_v49 = vmul.f32 %v2936_v5, %v2936_v5 }
 0x16e   : > { %3276 = vst [vmem:[#allocation9_spill] sm:$0xff] %v2939_v8  ;;  %v2945_v6 = vadd.f32 %v2840_v21, %v869_v2  ;;  %v1094_v9 = vsel %vm1021_vm1, %v2939_v8, 0.0  ;;  %v1143_v36 = vmul.f32 %v2939_v8, %v2939_v8 }
 0x16f   : > { %3277 = vst [vmem:[#allocation10_spill] sm:$0xff] %v2942_v39  ;;  %v1095_v12 = vadd.f32 %v1094_v9, %v2936_v5  ;;  %v1144_v40 = vmul.f32 %v2942_v39, %v2942_v39 }
 0x170   : > { %3278 = vst [vmem:[#allocation11_spill] sm:$0xff] %v2945_v6  ;;  %v1098_v15 = vsel %vm1021_vm1, %v2945_v6, 0.0  ;;  %v1145_v35 = vmul.f32 %v2945_v6, %v2945_v6  ;;  %v1220_v42 = vsel %vm1021_vm1, %v1143_v36, 0.0  ;;  %v1380_v6 = vld [vmem:[%s2994_s11 + $0x8] sm:$0xff] }
 0x171   : > { %1214 = vadd.xlane.f32.xlu1 %v1213_v1  ;;  %1096 = vadd.xlane.f32.xlu0 %v1095_v12  ;;  %v1099_v21 = vadd.f32 %v1098_v15, %v2942_v39  ;;  %v1221_v4 = vadd.f32 %v1220_v42, %v1142_v49 }
 0x172   : > { %v873_v38 = vpop.f32.mrb[40].mxu1  ;;  %v1224_v54 = vsel %vm1021_vm1, %v1145_v35, 0.0 }
 0x173   : > { %v2964_v58 = vadd.f32 %v2856_v26, %v873_v38  ;;  %v875_v46 = vpop.f32.mrb[41].mxu1  ;;  %v1225_v19 = vadd.f32 %v1224_v54, %v1144_v40 }
 0x174   : > { %v2967_v63 = vadd.f32 %v2865_v27, %v875_v46  ;;  %v877_v22 = vpop.f32.mrb[42].mxu1 }
 0x175   : > { %3279 = vst [vmem:[#allocation12_spill] sm:$0xff] %v2964_v58  ;;  %1100 = vadd.xlane.f32.xlu1 %v1099_v21  ;;  %1226 = vadd.xlane.f32.xlu0 %v1225_v19  ;;  %v1146_v7 = vmul.f32 %v2964_v58, %v2964_v58  ;;  %v878_v33 = vpop.f32.mrb[43].mxu1 }
 0x176   : > { %3280 = vst [vmem:[#allocation13_spill] sm:$0xff] %v2967_v63  ;;  %v1102_v59 = vsel %vm1021_vm1, %v2967_v63, 0.0  ;;  %v1147_v26 = vmul.f32 %v2967_v63, %v2967_v63 }
 0x177   : > { %v1103_v2 = vadd.f32 %v1102_v59, %v2964_v58 }
 0x178   : > { %v1228_v1 = vsel %vm1021_vm1, %v1147_v26, 0.0 }
 0x179   : > { %1222 = vadd.xlane.f32.xlu1 %v1221_v4  ;;  %1104 = vadd.xlane.f32.xlu0 %v1103_v2  ;;  %v1229_v27 = vadd.f32 %v1228_v1, %v1146_v7 }
 0x17d   : > { %1230 = vadd.xlane.f32.xlu1 %v1229_v27 }
 0x1b6   : > { %v1025_v9 = vpop.xlane.xlu0 %1024 }
 0x1b7   : > { %v1232_v36 = vmul.f32 0.0051020407, %v1025_v9 }
 0x1b8   : > { %v1151_v12 = vpop.xlane.xlu1 %1150 }
 0x1b9   : > { %v1274_v40 = vmul.f32 %v1232_v36, %v1232_v36  ;;  %v1253_v15 = vmul.f32 0.0051020407, %v1151_v12 }
 0x1ba   : > { %v1029_v35 = vpop.xlane.xlu0 %1028 }
 0x1bb   : > { %v1295_v21 = vsub.f32 %v1253_v15, %v1274_v40  ;;  %v2977_v49 = vmul.f32 0.0051020407, %v1029_v35 }
 0x1bd   : > { %v1316_v38 = vmax.f32 %v1295_v21, 0.0  ;;  %v1275_v19 = vmul.f32 %v2977_v49, %v2977_v49 }
 0x1be   : > { %v1155_v54 = vpop.xlane.xlu0 %1154  ;;  %v1033_v42 = vpop.xlane.xlu1 %1032 }
 0x1bf   : > { %v1337_v46 = vadd.f32 1e-05, %v1316_v38  ;;  %v1254_v22 = vmul.f32 0.0051020407, %v1155_v54  ;;  %v2981_v26 = vmul.f32 0.0051020407, %v1033_v42 }
 0x1c0   : > { %v1379_v42 = vld [vmem:[%s2994_s11] sm:$0xff] }
 0x1c1   : > { %2355 = vrsqrt.f32 %v1337_v46  ;;  %v1296_v4 = vsub.f32 %v1254_v22, %v1275_v19  ;;  %v1276_v15 = vmul.f32 %v2981_v26, %v2981_v26 }
 0x1c2   : > { %v1163_v7 = vpop.xlane.xlu0 %1162  ;;  %v1037_v33 = vpop.xlane.xlu1 %1036 }
 0x1c3   : > { %v1317_v59 = vmax.f32 %v1296_v4, 0.0  ;;  %v2986_v2 = vmul.f32 0.0051020407, %v1037_v33  ;;  %v1256_v27 = vmul.f32 0.0051020407, %v1163_v7 }
 0x1c5   : > { %v1338_v1 = vadd.f32 1e-05, %v1317_v59  ;;  %v1277_v9 = vmul.f32 %v2986_v2, %v2986_v2 }
 0x1c6   : > { %v1159_v12 = vpop.xlane.xlu1 %1158  ;;  %v1041_v40 = vpop.xlane.xlu0 %1040 }
 0x1c7   : > { %2357 = vrsqrt.f32 %v1338_v1  ;;  %v1298_v35 = vsub.f32 %v1256_v27, %v1277_v9  ;;  %v1255_v21 = vmul.f32 0.0051020407, %v1159_v12  ;;  %v2999_v46 = vmul.f32 0.0051020407, %v1041_v40  ;;  %v1421_v40 = vld [vmem:[%s3005_s13] sm:$0xff] }
 0x1c9   : > { %v1319_v38 = vmax.f32 %v1298_v35, 0.0  ;;  %v1297_v54 = vsub.f32 %v1255_v21, %v1276_v15 }
 0x1ca   : > { %v1045_v19 = vpop.xlane.xlu1 %1044  ;;  %v1171_v22 = vpop.xlane.xlu0 %1170 }
 0x1cb   : > { %v2356_v4 = vpop.eup %2355  ;;  %v1340_v7 = vadd.f32 1e-05, %v1319_v38  ;;  %v1318_v33 = vmax.f32 %v1297_v54, 0.0  ;;  %v3007_v59 = vmul.f32 0.0051020407, %v1045_v19  ;;  %v1278_v38 = vmul.f32 %v2999_v46, %v2999_v46 }
 0x1cc   : > { %v1258_v1 = vmul.f32 0.0051020407, %v1171_v22  ;;  %v1400_v27 = vmul.f32 %v2356_v4, %v1379_v42 }
 0x1cd   : > { %2359 = vrsqrt.f32 %v1340_v7  ;;  %v1339_v9 = vadd.f32 1e-05, %v1318_v33  ;;  %v1279_v12 = vmul.f32 %v3007_v59, %v3007_v59 }
 0x1ce   : > { %v1167_v15 = vpop.xlane.xlu1 %1166  ;;  %1486 = vperm.xlu0 %2247, %v1400_v27   ;;  %v1049_v35 = vpop.xlane.xlu0 %1048  ;;  %v1442_v21 = vmul.f32 %v1400_v27, %v1232_v36 }
 0x1cf   : > { %2361 = vrsqrt.f32 %v1339_v9  ;;  %v1300_v54 = vsub.f32 %v1258_v1, %v1279_v12  ;;  %v1257_v19 = vmul.f32 0.0051020407, %v1167_v15  ;;  %v3015_v33 = vmul.f32 0.0051020407, %v1049_v35  ;;  %v1422_v9 = vld [vmem:[%s3005_s13 + $0x8] sm:$0xff] }
 0x1d0   : > { %v1463_v22 = vsub.f32 %v1421_v40, %v1442_v21 }
 0x1d1   : > { %v2358_v42 = vpop.eup %2357  ;;  %v1321_v4 = vmax.f32 %v1300_v54, 0.0  ;;  %v1299_v7 = vsub.f32 %v1257_v19, %v1278_v38  ;;  %v1280_v15 = vmul.f32 %v3015_v33, %v3015_v33 }
 0x1d2   : > { %v1053_v39 = vpop.xlane.xlu1 %1052  ;;  %1633 = vperm.xlu0 %2247, %v1463_v22   ;;  %v1179_v63 = vpop.xlane.xlu0 %1178  ;;  %v1401_v58 = vmul.f32 %v2358_v42, %v1380_v6 }
 0x1d3   : > { %v1320_v36 = vmax.f32 %v1299_v7, 0.0  ;;  %v3017_v27 = vmul.f32 0.0051020407, %v1053_v39  ;;  %v1260_v8 = vmul.f32 0.0051020407, %v1179_v63  ;;  %v1382_v39 = vld [vmem:[%s2994_s11 + $0x18] sm:$0xff] }
 0x1d4   : > { %1491 = vperm.xlu1 %2248, %v1401_v58   ;;  %v1443_v1 = vmul.f32 %v1401_v58, %v2977_v49  ;;  %v1342_v12 = vadd.f32 1e-05, %v1321_v4  ;;  %v1381_v63 = vld [vmem:[%s2994_s11 + $0x10] sm:$0xff] }
 0x1d5   : > { %v1341_v40 = vadd.f32 1e-05, %v1320_v36  ;;  %v1281_v35 = vmul.f32 %v3017_v27, %v3017_v27 }
 0x1d6   : > { %v1175_v21 = vpop.xlane.xlu1 %1174  ;;  %v1057_v38 = vpop.xlane.xlu0 %1056  ;;  %v1464_v6 = vsub.f32 %v1422_v9, %v1443_v1  ;;  %v1423_v9 = vld [vmem:[%s3005_s13 + $0x10] sm:$0xff] }
 0x1d7   : > { %v2360_v54 = vpop.eup %2359  ;;  %2363 = vrsqrt.f32 %v1341_v40  ;;  %v1259_v19 = vmul.f32 0.0051020407, %v1175_v21  ;;  %v1302_v22 = vsub.f32 %v1260_v8, %v1281_v35  ;;  %v3027_v42 = vmul.f32 0.0051020407, %v1057_v38 }
 0x1d8   : > { %1638 = vperm.xlu1 %2248, %v1464_v6   ;;  %2365 = vrsqrt.f32 %v1342_v12  ;;  %v1403_v4 = vmul.f32 %v2360_v54, %v1382_v39 }
 0x1d9   : > { %v2362_v58 = vpop.eup %2361  ;;  %v1301_v49 = vsub.f32 %v1259_v19, %v1280_v15  ;;  %v1323_v1 = vmax.f32 %v1302_v22, 0.0  ;;  %v1282_v12 = vmul.f32 %v3027_v42, %v3027_v42  ;;  %v1383_v22 = vld [vmem:[%s2994_s11 + $0x20] sm:$0xff] }
 0x1da   : > { %v1061_v7 = vpop.xlane.xlu1 %1060  ;;  %v1187_v36 = vpop.xlane.xlu0 %1186  ;;  %v1402_v5 = vmul.f32 %v2362_v58, %v1381_v63  ;;  %v1445_v21 = vmul.f32 %v1403_v4, %v2986_v2  ;;  %v1424_v63 = vld [vmem:[%s3005_s13 + $0x18] sm:$0xff] }
 0x1db   : > { %v1322_v44 = vmax.f32 %v1301_v49, 0.0  ;;  %v3029_v31 = vmul.f32 0.0051020407, %v1061_v7  ;;  %v1262_v40 = vmul.f32 0.0051020407, %v1187_v36 }
 0x1dc   : > { %1496 = vperm.xlu1 %2248, %v1402_v5   ;;  %v1444_v8 = vmul.f32 %v1402_v5, %v2981_v26  ;;  %v1344_v58 = vadd.f32 1e-05, %v1323_v1  ;;  %v1466_v36 = vsub.f32 %v1424_v63, %v1445_v21 }
 0x1dd   : > { %v1343_v35 = vadd.f32 1e-05, %v1322_v44  ;;  %v1283_v15 = vmul.f32 %v3029_v31, %v3029_v31 }
 0x1de   : > { %v1183_v38 = vpop.xlane.xlu1 %1182  ;;  %v1065_v6 = vpop.xlane.xlu0 %1064  ;;  %v1465_v54 = vsub.f32 %v1423_v9, %v1444_v8  ;;  %v1384_v9 = vld [vmem:[%s2994_s11 + $0x28] sm:$0xff] }
 0x1df   : > { %2367 = vrsqrt.f32 %v1343_v35  ;;  %v1304_v39 = vsub.f32 %v1262_v40, %v1283_v15  ;;  %v1261_v19 = vmul.f32 0.0051020407, %v1183_v38  ;;  %v3040_v49 = vmul.f32 0.0051020407, %v1065_v6  ;;  %v1425_v38 = vld [vmem:[%s3005_s13 + $0x20] sm:$0xff] }
 0x1e0   : > { %1501 = vperm.xlu1 %2248, %v1403_v4   ;;  %1643 = vperm.xlu0 %2247, %v1465_v54   ;;  %2369 = vrsqrt.f32 %v1344_v58 }
 0x1e1   : > { %v2364_v44 = vpop.eup %2363  ;;  %v1325_v5 = vmax.f32 %v1304_v39, 0.0  ;;  %v1303_v26 = vsub.f32 %v1261_v19, %v1282_v12  ;;  %v1284_v6 = vmul.f32 %v3040_v49, %v3040_v49 }
 0x1e2   : > { %v1069_v7 = vpop.xlane.xlu1 %1068  ;;  %v1195_v2 = vpop.xlane.xlu0 %1194  ;;  %v1404_v17 = vmul.f32 %v2364_v44, %v1383_v22  ;;  %v1385_v44 = vld [vmem:[%s2994_s11 + $0x30] sm:$0xff] }
 0x1e3   : > { %v2366_v8 = vpop.eup %2365  ;;  %v1346_v35 = vadd.f32 1e-05, %v1325_v5  ;;  %v1324_v40 = vmax.f32 %v1303_v26, 0.0  ;;  %v3043_v15 = vmul.f32 0.0051020407, %v1069_v7 }
 0x1e4   : > { %v1264_v4 = vmul.f32 0.0051020407, %v1195_v2  ;;  %1648 = vperm.xlu1 %2248, %v1466_v36   ;;  %v1446_v1 = vmul.f32 %v1404_v17, %v2999_v46  ;;  %v1405_v63 = vmul.f32 %v2366_v8, %v1384_v9 }
 0x1e5   : > { %2371 = vrsqrt.f32 %v1346_v35  ;;  %v1345_v12 = vadd.f32 1e-05, %v1324_v40  ;;  %v1285_v21 = vmul.f32 %v3043_v15, %v3043_v15  ;;  %v1426_v35 = vld [vmem:[%s3005_s13 + $0x28] sm:$0xff] }
 0x1e6   : > { %v1191_v54 = vpop.xlane.xlu1 %1190  ;;  %v1073_v39 = vpop.xlane.xlu0 %1072  ;;  %v1467_v19 = vsub.f32 %v1425_v38, %v1446_v1  ;;  %v1447_v40 = vmul.f32 %v1405_v63, %v3007_v59 }
 0x1e7   : > { %2373 = vrsqrt.f32 %v1345_v12  ;;  %v1306_v22 = vsub.f32 %v1264_v4, %v1285_v21  ;;  %v1263_v58 = vmul.f32 0.0051020407, %v1191_v54  ;;  %v3052_v7 = vmul.f32 0.0051020407, %v1073_v39  ;;  %v1427_v4 = vld [vmem:[%s3005_s13 + $0x30] sm:$0xff] }
 0x1e8   : > { %1506 = vperm.xlu1 %2248, %v1404_v17   ;;  %1653 = vperm.xlu0 %2247, %v1467_v19   ;;  %v1468_v19 = vsub.f32 %v1426_v35, %v1447_v40 }
 0x1e9   : > { %v2368_v46 = vpop.eup %2367  ;;  %v1327_v5 = vmax.f32 %v1306_v22, 0.0  ;;  %v1305_v26 = vsub.f32 %v1263_v58, %v1284_v6  ;;  %v1286_v6 = vmul.f32 %v3052_v7, %v3052_v7 }
 0x1ea   : > { %v1077_v2 = vpop.xlane.xlu1 %1076  ;;  %v1203_v36 = vpop.xlane.xlu0 %1202  ;;  %v1406_v62 = vmul.f32 %v2368_v46, %v1385_v44  ;;  %v1388_v46 = vld [vmem:[%s2994_s11 + $0x48] sm:$0xff] }
 0x1eb   : > { %v1348_v38 = vadd.f32 1e-05, %v1327_v5  ;;  %v1326_v9 = vmax.f32 %v1305_v26, 0.0  ;;  %v3056_v8 = vmul.f32 0.0051020407, %v1077_v2  ;;  %v2370_v21 = vpop.eup %2369  ;;  %v1387_v5 = vld [vmem:[%s2994_s11 + $0x40] sm:$0xff] }
 0x1ec   : > { %v1266_v1 = vmul.f32 0.0051020407, %v1203_v36  ;;  %1511 = vperm.xlu1 %2248, %v1405_v63   ;;  %v1448_v17 = vmul.f32 %v1406_v62, %v3015_v33  ;;  %v1386_v33 = vld [vmem:[%s2994_s11 + $0x38] sm:$0xff] }
 0x1ed   : > { %2375 = vrsqrt.f32 %v1348_v38  ;;  %v1347_v12 = vadd.f32 1e-05, %v1326_v9  ;;  %v1287_v59 = vmul.f32 %v3056_v8, %v3056_v8  ;;  %v1407_v35 = vmul.f32 %v2370_v21, %v1386_v33  ;;  %v1390_v33 = vld [vmem:[%s2994_s11 + $0x58] sm:$0xff] }
 0x1ee   : > { %v1199_v54 = vpop.xlane.xlu1 %1198  ;;  %v1081_v39 = vpop.xlane.xlu0 %1080  ;;  %v1469_v22 = vsub.f32 %v1427_v4, %v1448_v17 }
 0x1ef   : > { %v2372_v58 = vpop.eup %2371  ;;  %2377 = vrsqrt.f32 %v1347_v12  ;;  %v1308_v63 = vsub.f32 %v1266_v1, %v1287_v59  ;;  %v1265_v44 = vmul.f32 0.0051020407, %v1199_v54  ;;  %v3067_v38 = vmul.f32 0.0051020407, %v1081_v39  ;;  %v1429_v12 = vld [vmem:[%s3005_s13 + $0x40] sm:$0xff] }
 0x1f0   : > { %1658 = vperm.xlu1 %2248, %v1468_v19   ;;  %1663 = vperm.xlu0 %2247, %v1469_v22   ;;  %v1409_v47 = vmul.f32 %v2372_v58, %v1388_v46  ;;  %v1428_v46 = vld [vmem:[%s3005_s13 + $0x38] sm:$0xff] }
 0x1f1   : > { %v2374_v26 = vpop.eup %2373  ;;  %v1329_v2 = vmax.f32 %v1308_v63, 0.0  ;;  %v1307_v36 = vsub.f32 %v1265_v44, %v1286_v6  ;;  %v1288_v39 = vmul.f32 %v3067_v38, %v3067_v38 }
 0x1f2   : > { %v1085_v9 = vpop.xlane.xlu1 %1084  ;;  %v1211_v57 = vpop.xlane.xlu0 %1210  ;;  %v1408_v40 = vmul.f32 %v2374_v26, %v1387_v5 }
 0x1f3   : > { %v1350_v4 = vadd.f32 1e-05, %v1329_v2  ;;  %v1328_v17 = vmax.f32 %v1307_v36, 0.0  ;;  %v3069_v1 = vmul.f32 0.0051020407, %v1085_v9 }
 0x1f4   : > { %v1268_v59 = vmul.f32 0.0051020407, %v1211_v57  ;;  %1516 = vperm.xlu1 %2248, %v1406_v62   ;;  %1531 = vperm.xlu0 %2247, %v1409_v47   ;;  %v1450_v6 = vmul.f32 %v1408_v40, %v3027_v42  ;;  %v1449_v57 = vmul.f32 %v1407_v35, %v3017_v27  ;;  %v1389_v42 = vld [vmem:[%s2994_s11 + $0x50] sm:$0xff] }
 0x1f5   : > { %2379 = vrsqrt.f32 %v1350_v4  ;;  %v1349_v54 = vadd.f32 1e-05, %v1328_v17  ;;  %v1289_v21 = vmul.f32 %v3069_v1, %v3069_v1 }
 0x1f6   : > { %v1207_v19 = vpop.xlane.xlu1 %1206  ;;  %v1089_v22 = vpop.xlane.xlu0 %1088  ;;  %v1471_v58 = vsub.f32 %v1429_v12, %v1450_v6  ;;  %v1470_v17 = vsub.f32 %v1428_v46, %v1449_v57 }
 0x1f7   : > { %v2376_v63 = vpop.eup %2375  ;;  %2381 = vrsqrt.f32 %v1349_v54  ;;  %v1310_v62 = vsub.f32 %v1268_v59, %v1289_v21  ;;  %v1267_v44 = vmul.f32 0.0051020407, %v1207_v19  ;;  %v3081_v36 = vmul.f32 0.0051020407, %v1089_v22  ;;  %v1431_v21 = vld [vmem:[%s3005_s13 + $0x50] sm:$0xff] }
 0x1f8   : > { %1521 = vperm.xlu1 %2248, %v1407_v35   ;;  %1673 = vperm.xlu0 %2247, %v1471_v58   ;;  %v1411_v12 = vmul.f32 %v2376_v63, %v1390_v33 }
 0x1f9   : > { %v2378_v5 = vpop.eup %2377  ;;  %v1331_v26 = vmax.f32 %v1310_v62, 0.0  ;;  %v1309_v2 = vsub.f32 %v1267_v44, %v1288_v39  ;;  %v1290_v22 = vmul.f32 %v3081_v36, %v3081_v36  ;;  %v1451_v44 = vmul.f32 %v1409_v47, %v3029_v31 }
 0x1fa   : > { %v1093_v9 = vpop.xlane.xlu1 %1092  ;;  %v1219_v4 = vpop.xlane.xlu0 %1218  ;;  %v1410_v27 = vmul.f32 %v2378_v5, %v1389_v42  ;;  %v1430_v5 = vld [vmem:[%s3005_s13 + $0x48] sm:$0xff] }
 0x1fb   : > { %v1352_v6 = vadd.f32 1e-05, %v1331_v26  ;;  %v1330_v54 = vmax.f32 %v1309_v2, 0.0  ;;  %v3083_v59 = vmul.f32 0.0051020407, %v1093_v9  ;;  %v1392_v26 = vld [vmem:[%s2994_s11 + $0x68] sm:$0xff] }
 0x1fc   : > { %v1270_v19 = vmul.f32 0.0051020407, %v1219_v4  ;;  %1668 = vperm.xlu1 %2248, %v1470_v17   ;;  %1541 = vperm.xlu0 %2247, %v1411_v12   ;;  %v1452_v35 = vmul.f32 %v1410_v27, %v3040_v49  ;;  %v1391_v49 = vld [vmem:[%s2994_s11 + $0x60] sm:$0xff] }
 0x1fd   : > { %2383 = vrsqrt.f32 %v1352_v6  ;;  %v1351_v39 = vadd.f32 1e-05, %v1330_v54  ;;  %v1291_v58 = vmul.f32 %v3083_v59, %v3083_v59 }
 0x1fe   : > { %v1215_v57 = vpop.xlane.xlu1 %1214  ;;  %v1097_v63 = vpop.xlane.xlu0 %1096  ;;  %v1473_v62 = vsub.f32 %v1431_v21, %v1452_v35  ;;  %v1472_v21 = vsub.f32 %v1430_v5, %v1451_v44  ;;  %v1453_v5 = vmul.f32 %v1411_v12, %v3043_v15 }
 0x1ff   : > { %v2380_v46 = vpop.eup %2379  ;;  %2385 = vrsqrt.f32 %v1351_v39  ;;  %v1312_v33 = vsub.f32 %v1270_v19, %v1291_v58  ;;  %v1269_v42 = vmul.f32 0.0051020407, %v1215_v57  ;;  %v3095_v17 = vmul.f32 0.0051020407, %v1097_v63  ;;  %v1433_v58 = vld [vmem:[%s3005_s13 + $0x60] sm:$0xff] }
 0x200   : > { %1526 = vperm.xlu1 %2248, %v1408_v40   ;;  %1683 = vperm.xlu0 %2247, %v1473_v62   ;;  %v1413_v35 = vmul.f32 %v2380_v46, %v1392_v26 }
 0x201   : > { %v2382_v2 = vpop.eup %2381  ;;  %v1333_v9 = vmax.f32 %v1312_v33, 0.0  ;;  %v1311_v4 = vsub.f32 %v1269_v42, %v1290_v22  ;;  %v1292_v63 = vmul.f32 %v3095_v17, %v3095_v17  ;;  %v1432_v42 = vld [vmem:[%s3005_s13 + $0x58] sm:$0xff] }
 0x202   : > { %v1101_v6 = vpop.xlane.xlu1 %1100  ;;  %v1227_v54 = vpop.xlane.xlu0 %1226  ;;  %v1412_v47 = vmul.f32 %v2382_v2, %v1391_v49 }
 0x203   : > { %v1354_v31 = vadd.f32 1e-05, %v1333_v9  ;;  %v1332_v19 = vmax.f32 %v1311_v4, 0.0  ;;  %v3097_v39 = vmul.f32 0.0051020407, %v1101_v6  ;;  %v1394_v9 = vld [vmem:[%s2994_s11 + $0x78] sm:$0xff] }
 0x204   : > { %v1272_v57 = vmul.f32 0.0051020407, %v1227_v54  ;;  %1678 = vperm.xlu1 %2248, %v1472_v21   ;;  %1551 = vperm.xlu0 %2247, %v1413_v35   ;;  %v1454_v40 = vmul.f32 %v1412_v47, %v3052_v7  ;;  %v1393_v4 = vld [vmem:[%s2994_s11 + $0x70] sm:$0xff] }
 0x205   : > { %2387 = vrsqrt.f32 %v1354_v31  ;;  %v1353_v22 = vadd.f32 1e-05, %v1332_v19  ;;  %v1293_v62 = vmul.f32 %v3097_v39, %v3097_v39 }
 0x206   : > { %v1223_v44 = vpop.xlane.xlu1 %1222  ;;  %v1475_v46 = vsub.f32 %v1433_v58, %v1454_v40  ;;  %v1105_v33 = vpop.xlane.xlu0 %1104  ;;  %v1474_v58 = vsub.f32 %v1432_v42, %v1453_v5 }
 0x207   : > { %v2384_v26 = vpop.eup %2383  ;;  %2389 = vrsqrt.f32 %v1353_v22  ;;  %v1314_v49 = vsub.f32 %v1272_v57, %v1293_v62  ;;  %v1271_v2 = vmul.f32 0.0051020407, %v1223_v44  ;;  %v3107_v7 = vmul.f32 0.0051020407, %v1105_v33  ;;  %v1435_v62 = vld [vmem:[%s3005_s13 + $0x70] sm:$0xff] }
 0x208   : > { %1536 = vperm.xlu1 %2248, %v1410_v27   ;;  %1693 = vperm.xlu0 %2247, %v1475_v46   ;;  %v1415_v15 = vmul.f32 %v2384_v26, %v1394_v9  ;;  %v1455_v33 = vmul.f32 %v1413_v35, %v3056_v8  ;;  %v1434_v26 = vld [vmem:[%s3005_s13 + $0x68] sm:$0xff] }
 0x209   : > { %v2386_v6 = vpop.eup %2385  ;;  %v1335_v54 = vmax.f32 %v1314_v49, 0.0  ;;  %v1313_v21 = vsub.f32 %v1271_v2, %v1292_v63  ;;  %v1294_v31 = vmul.f32 %v3107_v7, %v3107_v7  ;;  %v1396_v49 = vld [vmem:[%s2994_s11 + $0x88] sm:$0xff]  ;;  %v1395_v2 = vld [vmem:[%s2994_s11 + $0x80] sm:$0xff] }
 0x20a   : > { %v1231_v19 = vpop.xlane.xlu1 %1230  ;;  %v1414_v12 = vmul.f32 %v2386_v6, %v1393_v4  ;;  %v1476_v4 = vsub.f32 %v1434_v26, %v1455_v33 }
 0x20b   : > { %v1356_v57 = vadd.f32 1e-05, %v1335_v54  ;;  %v1334_v40 = vmax.f32 %v1313_v21, 0.0  ;;  %v1273_v22 = vmul.f32 0.0051020407, %v1231_v19  ;;  %v1437_v21 = vld [vmem:[%s3005_s13 + $0x80] sm:$0xff] }
 0x20c   : > { %1688 = vperm.xlu1 %2248, %v1474_v58   ;;  %1561 = vperm.xlu0 %2247, %v1415_v15   ;;  %v1456_v27 = vmul.f32 %v1414_v12, %v3067_v38  ;;  %v1436_v19 = vld [vmem:[%s3005_s13 + $0x78] sm:$0xff] }
 0x20d   : > { %2391 = vrsqrt.f32 %v1356_v57  ;;  %v1355_v63 = vadd.f32 1e-05, %v1334_v40  ;;  %v1315_v44 = vsub.f32 %v1273_v22, %v1294_v31  ;;  %v1457_v31 = vmul.f32 %v1415_v15, %v3069_v1  ;;  %v1398_v58 = vld [vmem:[%s2994_s11 + $0x98] sm:$0xff]  ;;  %v1397_v57 = vld [vmem:[%s2994_s11 + $0x90] sm:$0xff] }
 0x20e   : > { %v1477_v46 = vsub.f32 %v1435_v62, %v1456_v27 }
 0x20f   : > { %v2388_v42 = vpop.eup %2387  ;;  %2393 = vrsqrt.f32 %v1355_v63  ;;  %v1336_v5 = vmax.f32 %v1315_v44, 0.0  ;;  %v1478_v22 = vsub.f32 %v1436_v19, %v1457_v31  ;;  %v1439_v63 = vld [vmem:[%s3005_s13 + $0x90] sm:$0xff]  ;;  %v1399_v44 = vld [vmem:[%s2994_s11 + $0xa0] sm:$0xff] }
 0x210   : > { %1546 = vperm.xlu1 %2248, %v1412_v47   ;;  %1703 = vperm.xlu0 %2247, %v1477_v46   ;;  %v1417_v6 = vmul.f32 %v2388_v42, %v1396_v49  ;;  %v1438_v42 = vld [vmem:[%s3005_s13 + $0x88] sm:$0xff] }
 0x211   : > { %v2390_v9 = vpop.eup %2389  ;;  %v1357_v38 = vadd.f32 1e-05, %v1336_v5 }
 0x212   : > { %v1416_v54 = vmul.f32 %v2390_v9, %v1395_v2  ;;  %v1459_v46 = vmul.f32 %v1417_v6, %v3083_v59 }
 0x213   : > { %2395 = vrsqrt.f32 %v1357_v38 }
 0x214   : > { %1698 = vperm.xlu1 %2248, %v1476_v4   ;;  %1571 = vperm.xlu0 %2247, %v1417_v6   ;;  %v1458_v8 = vmul.f32 %v1416_v54, %v3081_v36  ;;  %v1480_v26 = vsub.f32 %v1438_v42, %v1459_v46 }
 0x216   : > { %v1479_v35 = vsub.f32 %v1437_v21, %v1458_v8 }
 0x217   : > { %v2392_v47 = vpop.eup %2391 }
 0x218   : > { %1556 = vperm.xlu1 %2248, %v1414_v12   ;;  %1713 = vperm.xlu0 %2247, %v1479_v35   ;;  %v1419_v62 = vmul.f32 %v2392_v47, %v1398_v58  ;;  %v1441_v12 = vld [vmem:[%s3005_s13 + $0xa0] sm:$0xff] }
 0x219   : > { %v2394_v40 = vpop.eup %2393 }
 0x21a   : > { %v1418_v27 = vmul.f32 %v2394_v40, %v1397_v57  ;;  %v1461_v2 = vmul.f32 %v1419_v62, %v3097_v39 }
 0x21c   : > { %1708 = vperm.xlu1 %2248, %v1478_v22   ;;  %1581 = vperm.xlu0 %2247, %v1419_v62   ;;  %v1460_v36 = vmul.f32 %v1418_v27, %v3095_v17  ;;  %v1440_v17 = vld [vmem:[%s3005_s13 + $0x98] sm:$0xff] }
 0x21d   : > { %v2396_v1 = vpop.eup %2395  ;;  %v1482_v9 = vsub.f32 %v1440_v17, %v1461_v2 }
 0x21e   : > { %v1481_v15 = vsub.f32 %v1439_v63, %v1460_v36  ;;  %v1420_v33 = vmul.f32 %v2396_v1, %v1399_v44 }
 0x220   : > { %1566 = vperm.xlu1 %2248, %v1416_v54   ;;  %1723 = vperm.xlu0 %2247, %v1481_v15   ;;  %v1462_v5 = vmul.f32 %v1420_v33, %v3107_v7 }
 0x222   : > { %v1483_v49 = vsub.f32 %v1441_v12, %v1462_v5 }
 0x224   : > { %1718 = vperm.xlu1 %2248, %v1480_v26   ;;  %1733 = vperm.xlu0 %2247, %v1483_v49  }
 0x228   : > { %1576 = vperm.xlu1 %2248, %v1418_v27  }
 0x22c   : > { %1586 = vperm.xlu1 %2248, %v1420_v33  }
 0x230   : > { %1728 = vperm.xlu1 %2248, %v1482_v9  }
 0x24d   : > { %v1487_v59 = vpop.permute.xlu0 %1486 }
 0x24e   : > { %v1589_v38 = vmul.f32 %v1487_v59, %v2641_v30  ;;  %v1590_v4 = vmul.f32 %v1487_v59, %v2643_v32 }
 0x251   : > { %v1634_v6 = vpop.permute.xlu0 %1633 }
 0x252   : > { %v1736_v7 = vadd.f32 %v1634_v6, %v1589_v38  ;;  %v1737_v54 = vadd.f32 %v1634_v6, %v1590_v4 }
 0x253   : > { %v1492_v21 = vpop.permute.xlu1 %1491 }
 0x254   : > { %v1778_v8 = vmax.f32 %v1736_v7, 0.0  ;;  %v1779_v35 = vmax.f32 %v1737_v54, 0.0  ;;  %v1591_v32 = vmul.f32 %v1492_v21, %v2645_v34  ;;  %v1592_v31 = vmul.f32 %v1492_v21, %v2649_v37 }
 0x256   : > { %v2174_v30 = vpack.c.bf16 %v1779_v35, %v1778_v8 }
 0x257   : > { %v1639_v47 = vpop.permute.xlu1 %1638 }
 0x258   : > { %1951 = vst.msk [vmem:[%s3140_s16] sm:$0xff] %vm3142_vm4, %v2174_v30  ;;  %v1738_v19 = vadd.f32 %v1639_v47, %v1591_v32  ;;  %v1739_v58 = vadd.f32 %v1639_v47, %v1592_v31 }
 0x25a   : > { %v1780_v57 = vmax.f32 %v1738_v19, 0.0  ;;  %v1781_v40 = vmax.f32 %v1739_v58, 0.0 }
 0x25b   : > { %v1497_v22 = vpop.permute.xlu1 %1496 }
 0x25c   : > { %v2175_v62 = vpack.c.bf16 %v1781_v40, %v1780_v57  ;;  %v1593_v27 = vmul.f32 %v1497_v22, %v2669_v50  ;;  %v1594_v34 = vmul.f32 %v1497_v22, %v2672_v53 }
 0x25e   : > { %1952 = vst.msk [vmem:[%s3140_s16 + $0x8] sm:$0xff] %vm3142_vm4, %v2175_v62 }
 0x25f   : > { %v1502_v63 = vpop.permute.xlu1 %1501  ;;  %v1644_v37 = vpop.permute.xlu0 %1643 }
 0x260   : > { %v1740_v44 = vadd.f32 %v1644_v37, %v1593_v27  ;;  %v1741_v36 = vadd.f32 %v1644_v37, %v1594_v34  ;;  %v1595_v1 = vmul.f32 %v1502_v63, %v2675_v56  ;;  %v1596_v15 = vmul.f32 %v1502_v63, %v2681_v60 }
 0x262   : > { %v1782_v46 = vmax.f32 %v1740_v44, 0.0  ;;  %v1783_v33 = vmax.f32 %v1741_v36, 0.0 }
 0x263   : > { %v1649_v42 = vpop.permute.xlu1 %1648 }
 0x264   : > { %v2176_v12 = vpack.c.bf16 %v1783_v33, %v1782_v46  ;;  %v1742_v5 = vadd.f32 %v1649_v42, %v1595_v1  ;;  %v1743_v26 = vadd.f32 %v1649_v42, %v1596_v15 }
 0x266   : > { %1953 = vst.msk [vmem:[%s3140_s16 + $0x10] sm:$0xff] %vm3142_vm4, %v2176_v12  ;;  %v1784_v50 = vmax.f32 %v1742_v5, 0.0  ;;  %v1785_v53 = vmax.f32 %v1743_v26, 0.0 }
 0x267   : > { %v1507_v49 = vpop.permute.xlu1 %1506  ;;  %v1654_v9 = vpop.permute.xlu0 %1653 }
 0x268   : > { %v2177_v2 = vpack.c.bf16 %v1785_v53, %v1784_v50  ;;  %v1597_v17 = vmul.f32 %v1507_v49, %v2701_v10  ;;  %v1598_v56 = vmul.f32 %v1507_v49, %v2704_v13 }
 0x26a   : > { %1954 = vst.msk [vmem:[%s3140_s16 + $0x18] sm:$0xff] %vm3142_vm4, %v2177_v2  ;;  %v1744_v60 = vadd.f32 %v1654_v9, %v1597_v17  ;;  %v1745_v59 = vadd.f32 %v1654_v9, %v1598_v56 }
 0x26b   : > { %v1512_v38 = vpop.permute.xlu1 %1511 }
 0x26c   : > { %v1786_v4 = vmax.f32 %v1744_v60, 0.0  ;;  %v1787_v6 = vmax.f32 %v1745_v59, 0.0  ;;  %v1599_v54 = vmul.f32 %v1512_v38, %v2708_v16  ;;  %v1600_v21 = vmul.f32 %v1512_v38, %v2715_v20 }
 0x26e   : > { %v2178_v7 = vpack.c.bf16 %v1787_v6, %v1786_v4 }
 0x26f   : > { %v1659_v8 = vpop.permute.xlu1 %1658  ;;  %v1664_v35 = vpop.permute.xlu0 %1663 }
 0x270   : > { %1955 = vst.msk [vmem:[%s3140_s16 + $0x20] sm:$0xff] %vm3142_vm4, %v2178_v7  ;;  %v1746_v10 = vadd.f32 %v1659_v8, %v1599_v54  ;;  %v1747_v13 = vadd.f32 %v1659_v8, %v1600_v21 }
 0x272   : > { %v1788_v30 = vmax.f32 %v1746_v10, 0.0  ;;  %v1789_v32 = vmax.f32 %v1747_v13, 0.0 }
 0x273   : > { %v1517_v31 = vpop.permute.xlu1 %1516  ;;  %v1532_v47 = vpop.permute.xlu0 %1531 }
 0x274   : > { %v2179_v19 = vpack.c.bf16 %v1789_v32, %v1788_v30  ;;  %v1601_v58 = vmul.f32 %v1517_v31, %v2737_v45  ;;  %v1602_v57 = vmul.f32 %v1517_v31, %v2742_v51 }
 0x276   : > { %1956 = vst.msk [vmem:[%s3140_s16 + $0x28] sm:$0xff] %vm3142_vm4, %v2179_v19  ;;  %v1748_v16 = vadd.f32 %v1664_v35, %v1601_v58  ;;  %v1749_v20 = vadd.f32 %v1664_v35, %v1602_v57 }
 0x277   : > { %v1522_v40 = vpop.permute.xlu1 %1521  ;;  %v1674_v22 = vpop.permute.xlu0 %1673 }
 0x278   : > { %v1790_v62 = vmax.f32 %v1748_v16, 0.0  ;;  %v1791_v27 = vmax.f32 %v1749_v20, 0.0  ;;  %v1603_v63 = vmul.f32 %v1522_v40, %v2746_v55  ;;  %v1604_v37 = vmul.f32 %v1522_v40, %v2751_v25 }
 0x279   : > { %v1607_v55 = vmul.f32 %v1532_v47, %v2782_v29  ;;  %v1608_v25 = vmul.f32 %v1532_v47, %v2787_v24 }
 0x27a   : > { %v2180_v34 = vpack.c.bf16 %v1791_v27, %v1790_v62 }
 0x27b   : > { %v1669_v44 = vpop.permute.xlu1 %1668  ;;  %v1542_v36 = vpop.permute.xlu0 %1541 }
 0x27c   : > { %1957 = vst.msk [vmem:[%s3140_s16 + $0x30] sm:$0xff] %vm3142_vm4, %v2180_v34  ;;  %v1750_v45 = vadd.f32 %v1669_v44, %v1603_v63  ;;  %v1751_v51 = vadd.f32 %v1669_v44, %v1604_v37  ;;  %v1611_v6 = vmul.f32 %v1542_v36, %v2818_v28  ;;  %v1612_v7 = vmul.f32 %v1542_v36, %v2823_v11 }
 0x27e   : > { %v1792_v1 = vmax.f32 %v1750_v45, 0.0  ;;  %v1793_v15 = vmax.f32 %v1751_v51, 0.0  ;;  %v3283_v51 = vld [vmem:[#allocation2_spill] sm:$0xff] }
 0x27f   : > { %v1527_v46 = vpop.permute.xlu1 %1526  ;;  %v1684_v33 = vpop.permute.xlu0 %1683 }
 0x280   : > { %v2181_v42 = vpack.c.bf16 %v1793_v15, %v1792_v1  ;;  %v1605_v12 = vmul.f32 %v1527_v46, %v2776_v14  ;;  %v1606_v5 = vmul.f32 %v1527_v46, %v2779_v18  ;;  %v3284_v15 = vld [vmem:[#allocation3_spill] sm:$0xff] }
 0x282   : > { %1958 = vst.msk [vmem:[%s3140_s16 + $0x38] sm:$0xff] %vm3142_vm4, %v2181_v42  ;;  %v1752_v26 = vadd.f32 %v1674_v22, %v1605_v12  ;;  %v1753_v50 = vadd.f32 %v1674_v22, %v1606_v5 }
 0x283   : > { %v1679_v53 = vpop.permute.xlu1 %1678  ;;  %v1552_v49 = vpop.permute.xlu0 %1551 }
 0x284   : > { %v1794_v2 = vmax.f32 %v1752_v26, 0.0  ;;  %v1795_v17 = vmax.f32 %v1753_v50, 0.0  ;;  %v1754_v56 = vadd.f32 %v1679_v53, %v1607_v55  ;;  %v1755_v9 = vadd.f32 %v1679_v53, %v1608_v25 }
 0x285   : > { %v1615_v57 = vmul.f32 %v1552_v49, %v2854_v52  ;;  %v1616_v16 = vmul.f32 %v1552_v49, %v2859_v0 }
 0x286   : > { %v2182_v14 = vpack.c.bf16 %v1795_v17, %v1794_v2  ;;  %v1796_v60 = vmax.f32 %v1754_v56, 0.0  ;;  %v1797_v18 = vmax.f32 %v1755_v9, 0.0  ;;  %v3285_v17 = vld [vmem:[#allocation4_spill] sm:$0xff]  ;;  %v3286_v9 = vld [vmem:[#allocation5_spill] sm:$0xff] }
 0x287   : > { %v1537_v59 = vpop.permute.xlu1 %1536  ;;  %v1694_v29 = vpop.permute.xlu0 %1693 }
 0x288   : > { %1959 = vst.msk [vmem:[%s3140_s16 + $0x40] sm:$0xff] %vm3142_vm4, %v2182_v14  ;;  %v2183_v24 = vpack.c.bf16 %v1797_v18, %v1796_v60  ;;  %v1609_v38 = vmul.f32 %v1537_v59, %v2812_v61  ;;  %v1610_v4 = vmul.f32 %v1537_v59, %v2815_v3  ;;  %v3287_v18 = vld [vmem:[#allocation6_spill] sm:$0xff] }
 0x28a   : > { %1960 = vst.msk [vmem:[%s3140_s16 + $0x48] sm:$0xff] %vm3142_vm4, %v2183_v24  ;;  %v1756_v54 = vadd.f32 %v1684_v33, %v1609_v38  ;;  %v1757_v21 = vadd.f32 %v1684_v33, %v1610_v4 }
 0x28b   : > { %v1689_v8 = vpop.permute.xlu1 %1688  ;;  %v1562_v35 = vpop.permute.xlu0 %1561 }
 0x28c   : > { %v1798_v10 = vmax.f32 %v1756_v54, 0.0  ;;  %v1799_v13 = vmax.f32 %v1757_v21, 0.0  ;;  %v1758_v30 = vadd.f32 %v1689_v8, %v1611_v6  ;;  %v1759_v32 = vadd.f32 %v1689_v8, %v1612_v7 }
 0x28d   : > { %v1619_v1 = vmul.f32 %v1562_v35, %v3283_v51  ;;  %v1620_v46 = vmul.f32 %v1562_v35, %v3284_v15 }
 0x28e   : > { %v2184_v61 = vpack.c.bf16 %v1799_v13, %v1798_v10  ;;  %v1800_v31 = vmax.f32 %v1758_v30, 0.0  ;;  %v1801_v3 = vmax.f32 %v1759_v32, 0.0 }
 0x28f   : > { %v1547_v47 = vpop.permute.xlu1 %1546  ;;  %v1704_v28 = vpop.permute.xlu0 %1703 }
 0x290   : > { %1961 = vst.msk [vmem:[%s3140_s16 + $0x50] sm:$0xff] %vm3142_vm4, %v2184_v61  ;;  %v2185_v11 = vpack.c.bf16 %v1801_v3, %v1800_v31  ;;  %v1613_v19 = vmul.f32 %v1547_v47, %v2848_v43  ;;  %v1614_v58 = vmul.f32 %v1547_v47, %v2851_v48  ;;  %v3289_v31 = vld [vmem:[#allocation8_spill] sm:$0xff]  ;;  %v3290_v47 = vld [vmem:[#allocation9_spill] sm:$0xff] }
 0x292   : > { %1962 = vst.msk [vmem:[%s3140_s16 + $0x58] sm:$0xff] %vm3142_vm4, %v2185_v11  ;;  %v1760_v20 = vadd.f32 %v1694_v29, %v1613_v19  ;;  %v1761_v40 = vadd.f32 %v1694_v29, %v1614_v58  ;;  %v3288_v29 = vld [vmem:[#allocation7_spill] sm:$0xff] }
 0x293   : > { %v1699_v22 = vpop.permute.xlu1 %1698  ;;  %v1572_v37 = vpop.permute.xlu0 %1571 }
 0x294   : > { %v1802_v62 = vmax.f32 %v1760_v20, 0.0  ;;  %v1803_v27 = vmax.f32 %v1761_v40, 0.0  ;;  %v1762_v34 = vadd.f32 %v1699_v22, %v1615_v57  ;;  %v1763_v63 = vadd.f32 %v1699_v22, %v1616_v16  ;;  %v3291_v20 = vld [vmem:[#allocation12_spill] sm:$0xff]  ;;  %v3292_v22 = vld [vmem:[#allocation13_spill] sm:$0xff] }
 0x295   : > { %v1623_v59 = vmul.f32 %v1572_v37, %v3287_v18  ;;  %v1624_v24 = vmul.f32 %v1572_v37, %v3288_v29  ;;  %v3294_v37 = vld [vmem:[#allocation11_spill] sm:$0xff] }
 0x296   : > { %v2186_v43 = vpack.c.bf16 %v1803_v27, %v1802_v62  ;;  %v1804_v44 = vmax.f32 %v1762_v34, 0.0  ;;  %v1805_v48 = vmax.f32 %v1763_v63, 0.0  ;;  %v3293_v27 = vld [vmem:[#allocation10_spill] sm:$0xff] }
 0x297   : > { %v1557_v36 = vpop.permute.xlu1 %1556  ;;  %v1714_v12 = vpop.permute.xlu0 %1713 }
 0x298   : > { %1963 = vst.msk [vmem:[%s3140_s16 + $0x60] sm:$0xff] %vm3142_vm4, %v2186_v43  ;;  %v2187_v52 = vpack.c.bf16 %v1805_v48, %v1804_v44  ;;  %v1617_v0 = vmul.f32 %v1557_v36, %v2880_v23  ;;  %v1618_v45 = vmul.f32 %v1557_v36, %v2883_v41 }
 0x29a   : > { %1964 = vst.msk [vmem:[%s3140_s16 + $0x68] sm:$0xff] %vm3142_vm4, %v2187_v52  ;;  %v1764_v33 = vadd.f32 %v1704_v28, %v1617_v0  ;;  %v1765_v42 = vadd.f32 %v1704_v28, %v1618_v45 }
 0x29b   : > { %v1709_v5 = vpop.permute.xlu1 %1708  ;;  %v1582_v60 = vpop.permute.xlu0 %1581 }
 0x29c   : > { %v1806_v55 = vmax.f32 %v1764_v33, 0.0  ;;  %v1807_v25 = vmax.f32 %v1765_v42, 0.0  ;;  %v1766_v26 = vadd.f32 %v1709_v5, %v1619_v1  ;;  %v1767_v50 = vadd.f32 %v1709_v5, %v1620_v46 }
 0x29d   : > { %v1627_v34 = vmul.f32 %v1582_v60, %v3293_v27  ;;  %v1628_v43 = vmul.f32 %v1582_v60, %v3294_v37 }
 0x29e   : > { %v2188_v23 = vpack.c.bf16 %v1807_v25, %v1806_v55  ;;  %v1808_v53 = vmax.f32 %v1766_v26, 0.0  ;;  %v1809_v41 = vmax.f32 %v1767_v50, 0.0 }
 0x29f   : > { %v1567_v49 = vpop.permute.xlu1 %1566  ;;  %v1724_v30 = vpop.permute.xlu0 %1723 }
 0x2a0   : > { %1965 = vst.msk [vmem:[%s3140_s16 + $0x70] sm:$0xff] %vm3142_vm4, %v2188_v23  ;;  %v2189_v2 = vpack.c.bf16 %v1809_v41, %v1808_v53  ;;  %v1621_v56 = vmul.f32 %v1567_v49, %v3285_v17  ;;  %v1622_v14 = vmul.f32 %v1567_v49, %v3286_v9 }
 0x2a2   : > { %1966 = vst.msk [vmem:[%s3140_s16 + $0x78] sm:$0xff] %vm3142_vm4, %v2189_v2  ;;  %v1768_v38 = vadd.f32 %v1714_v12, %v1621_v56  ;;  %v1769_v4 = vadd.f32 %v1714_v12, %v1622_v14 }
 0x2a3   : > { %v1719_v6 = vpop.permute.xlu1 %1718  ;;  %v1734_v63 = vpop.permute.xlu0 %1733 }
 0x2a4   : > { %v1810_v7 = vmax.f32 %v1768_v38, 0.0  ;;  %v1811_v54 = vmax.f32 %v1769_v4, 0.0  ;;  %v1770_v21 = vadd.f32 %v1719_v6, %v1623_v59  ;;  %v1771_v8 = vadd.f32 %v1719_v6, %v1624_v24 }
 0x2a6   : > { %v2190_v35 = vpack.c.bf16 %v1811_v54, %v1810_v7  ;;  %v1812_v10 = vmax.f32 %v1770_v21, 0.0  ;;  %v1813_v13 = vmax.f32 %v1771_v8, 0.0 }
 0x2a7   : > { %v1577_v32 = vpop.permute.xlu1 %1576 }
 0x2a8   : > { %1967 = vst.msk [vmem:[%s3140_s16 + $0x80] sm:$0xff] %vm3142_vm4, %v2190_v35  ;;  %v2191_v61 = vpack.c.bf16 %v1813_v13, %v1812_v10  ;;  %v1625_v3 = vmul.f32 %v1577_v32, %v3289_v31  ;;  %v1626_v28 = vmul.f32 %v1577_v32, %v3290_v47 }
 0x2aa   : > { %1968 = vst.msk [vmem:[%s3140_s16 + $0x88] sm:$0xff] %vm3142_vm4, %v2191_v61  ;;  %v1772_v11 = vadd.f32 %v1724_v30, %v1625_v3  ;;  %v1773_v19 = vadd.f32 %v1724_v30, %v1626_v28 }
 0x2ab   : > { %v1587_v58 = vpop.permute.xlu1 %1586 }
 0x2ac   : > { %v1814_v57 = vmax.f32 %v1772_v11, 0.0  ;;  %v1815_v16 = vmax.f32 %v1773_v19, 0.0  ;;  %v1629_v40 = vmul.f32 %v1587_v58, %v3291_v20  ;;  %v1630_v62 = vmul.f32 %v1587_v58, %v3292_v22 }
 0x2ae   : > { %v2192_v44 = vpack.c.bf16 %v1815_v16, %v1814_v57  ;;  %v1776_v48 = vadd.f32 %v1734_v63, %v1629_v40  ;;  %v1777_v36 = vadd.f32 %v1734_v63, %v1630_v62 }
 0x2af   : > { %v1729_v52 = vpop.permute.xlu1 %1728 }
 0x2b0   : > { %1969 = vst.msk [vmem:[%s3140_s16 + $0x90] sm:$0xff] %vm3142_vm4, %v2192_v44  ;;  %v1818_v0 = vmax.f32 %v1776_v48, 0.0  ;;  %v1819_v45 = vmax.f32 %v1777_v36, 0.0  ;;  %v1774_v51 = vadd.f32 %v1729_v52, %v1627_v34  ;;  %v1775_v1 = vadd.f32 %v1729_v52, %v1628_v43 }
 0x2b2   : > { %v2194_v15 = vpack.c.bf16 %v1819_v45, %v1818_v0  ;;  %v1816_v46 = vmax.f32 %v1774_v51, 0.0  ;;  %v1817_v33 = vmax.f32 %v1775_v1, 0.0 }
 0x2b4   : > { %1971 = vst.msk [vmem:[%s3140_s16 + $0xa0] sm:$0xff] %vm3142_vm4, %v2194_v15  ;;  %v2193_v42 = vpack.c.bf16 %v1817_v33, %v1816_v46 }
 0x2b6   : > { %1970 = vst.msk [vmem:[%s3140_s16 + $0x98] sm:$0xff] %vm3142_vm4, %v2193_v42 }
 0x2b7 PF: > { %s14_s15 = sadd.s32 1, %s2403_s15  }
 0x2b8   : > { %p11_p4 = scmp.ge.s32.totalorder %s14_s15, 4  }
 0x2ba   :  { %13 = sbr.rel (!%p11_p4) target bundleno = 1 (0x1), region = 72 }

</bundles_post_ra>
